<compile_context>
chip_gen: v7x
topology: tpu7x:2x2x1
jax: 0.10.0
libtpu: 0.0.40
codegen_flags: <defaults>
</compile_context>

<pallas_src>
import jax
import jax.numpy as jnp
from jax.experimental import pallas as pl
from jax.experimental.pallas import tpu as pltpu

_LANE = 128
_ROW_ALIGN = 32            # multiple of the worst-case sublane packing (int8/fp8)
_MIN_PALLAS_BYTES = 1 << 20  # below this, XLA's fused elementwise is strictly faster


def _target_block_bytes():
    """Generation-aware block size (bytes) for the streaming sigmoid."""
    try:
        kind = jax.devices()[0].device_kind.lower()
    except Exception:
        return 2 * 1024 * 1024
    if "v7" in kind or "7x" in kind:
        return 6 * 1024 * 1024   # 4x6 MiB buffers = 24 MiB < 32 MiB scoped default
    if "v6" in kind:
        return 4 * 1024 * 1024   # 4x4 MiB = 16 MiB < 32 MiB scoped default
    return 2 * 1024 * 1024       # v5e and unknown: 4x2 MiB = 8 MiB < 16 MiB default


def _sigmoid_kernel(x_ref, o_ref):
    # Native-dtype sigmoid; exp goes to the EUP slot, effectively free next to
    # the HBM-bound loads/stores.
    o_ref[...] = jax.nn.sigmoid(x_ref[...])


def _pick_tile_rows(rows, lanes, itemsize):
    """Largest 32-aligned row tile near the target block size, with >=2 grid steps."""
    bytes_per_row = lanes * itemsize
    target_rows = max(_ROW_ALIGN, _target_block_bytes() // bytes_per_row)
    target_rows = (target_rows // _ROW_ALIGN) * _ROW_ALIGN

    if rows <= 2 * _ROW_ALIGN:
        # Too small to split into two >=32-row blocks: single full-extent block
        # (block dim == full array dim is always legal, even when rows < 8).
        return rows

    # Cap at ~half the rows (rounded to 32) so the grid has at least 2 steps;
    # Pallas masks the ragged last block of an elementwise op harmlessly.
    half_rows = max(_ROW_ALIGN, ((rows + 1) // 2 // _ROW_ALIGN) * _ROW_ALIGN)
    return min(target_rows, half_rows)


def _sigmoid_pallas_2d(x2d, total_elems, donate_input=False):
    """x2d: [rows, lanes] with lanes a multiple of 128."""
    rows, lanes = x2d.shape
    itemsize = x2d.dtype.itemsize
    tile_rows = _pick_tile_rows(rows, lanes, itemsize)
    grid = (pl.cdiv(rows, tile_rows),)

    return pl.pallas_call(
        _sigmoid_kernel,
        out_shape=jax.ShapeDtypeStruct(x2d.shape, x2d.dtype),
        grid_spec=pltpu.PrefetchScalarGridSpec(
            num_scalar_prefetch=0,
            grid=grid,
            in_specs=[pl.BlockSpec((tile_rows, lanes), lambda i: (i, 0))],
            out_specs=pl.BlockSpec((tile_rows, lanes), lambda i: (i, 0)),
        ),
        compiler_params=pltpu.CompilerParams(
            # Elementwise-independent axis: lets v7x shard grid steps across
            # its two TensorCores (no-op on single-TC v5e/v6e).
            dimension_semantics=("parallel",)),
        cost_estimate=pl.CostEstimate(
            flops=0,
            transcendentals=total_elems,
            bytes_accessed=2 * total_elems * itemsize),
        # Only alias when the caller actually donates logits; otherwise XLA
        # would insert a defensive copy (an extra HBM pass).
        input_output_aliases=({0: 0} if donate_input else {}),
    )(x2d)


def normal_mean_likelihood_sigmoid(logits, std, donate_logits=False):
    """Forward pass of NormalMeanLikelihoodSigmoid.

    Returns (mean, scale): mean = sigmoid(logits) (Pallas on large aligned
    tensors, fused XLA sigmoid otherwise), scale = the scalar std (the Normal
    distribution's scale parameter, kept un-materialized and in float32 —
    consumers broadcast it for free).
    """
    orig_shape = logits.shape
    n = 1
    for d in orig_shape:
        n *= int(d)

    # Scalar scale — full precision regardless of logits dtype (matches torch).
    scale = jnp.asarray(std, dtype=jnp.float32)
    # TODO(synk): td.Normal distribution object (log_prob/sample methods) has
    # no Pallas equivalent; we return its parameters (mean, scale) instead.

    # Tiny tensors: Mosaic custom-call fixed cost dominates — use XLA directly.
    # Ragged tensors (n % 128 != 0): XLA handles them at roofline with no
    # pad/slice extra HBM passes.
    if n == 0 or n * logits.dtype.itemsize < _MIN_PALLAS_BYTES or n % _LANE != 0:
        return jax.nn.sigmoid(logits), scale

    # Pick the widest lane-dense slab width (multiple of 128) that divides n.
    # Image tensors have power-of-two element counts, so the reshape is free.
    lanes = _LANE
    for cand in (1024, 512, 256, 128):
        if n % cand == 0:
            lanes = cand
            break
    x2d = logits.reshape(-1, lanes)

    mu2d = _sigmoid_pallas_2d(x2d, n, donate_input=donate_logits)
    mu = mu2d.reshape(orig_shape)
    return mu, scale


if __name__ == "__main__":
    key = jax.random.PRNGKey(0)
    std = 0.1  # NormalMeanLikelihoodSigmoid.create(std=0.1)

    # --- Case 1: small tensor consistent with the module's typical use ------
    # domain_size = C*H*W; tiny input takes the fast XLA-bypass path.
    logits_small = jax.random.normal(key, (2, 4, 16, 16), dtype=jnp.float32)
    mean_s, scale_s = normal_mean_likelihood_sigmoid(logits_small, std)
    mean_s = jax.block_until_ready(mean_s)
    ref_s = jax.nn.sigmoid(logits_small)
    assert mean_s.shape == logits_small.shape and mean_s.dtype == logits_small.dtype
    assert jnp.max(jnp.abs(mean_s - ref_s)) < 1e-5
    assert scale_s.dtype == jnp.float32 and jnp.allclose(scale_s, jnp.float32(std))

    # scale must stay float32 even for low-precision logits.
    _, scale_bf16 = normal_mean_likelihood_sigmoid(
        logits_small.astype(jnp.bfloat16), std)
    assert scale_bf16.dtype == jnp.float32

    # --- Case 2: larger image batch -> exercises the Pallas kernel ----------
    logits_big = jax.random.normal(
        jax.random.PRNGKey(0), (2, 4, 256, 256), dtype=jnp.float32)  # 2 MiB
    mean_b, scale_b = normal_mean_likelihood_sigmoid(logits_big, std)
    mean_b = jax.block_until_ready(mean_b)
    scale_b = jax.block_until_ready(scale_b)
    ref_b = jax.nn.sigmoid(logits_big)
    assert mean_b.shape == logits_big.shape and mean_b.dtype == logits_big.dtype
    assert jnp.max(jnp.abs(mean_b - ref_b)) < 1e-5
    assert jnp.allclose(scale_b, jnp.float32(std))

    print("KERNEL_OK")
</pallas_src>

<mosaic_0001>
module attributes {stable_mosaic.version = 11 : i64} {
  func.func @_sigmoid_kernel(%arg0: i32, %arg1: memref<256x1024xf32, #tpu.memory_space<vmem>>, %arg2: memref<256x1024xf32, #tpu.memory_space<vmem>>) attributes {dimension_semantics = [#tpu.dimension_semantics<parallel>], iteration_bounds = array<i64: 2>, scalar_prefetch = 0 : i64, scratch_operands = 0 : i64, tpu.core_type = #tpu.core_type<tc>, window_params = [{transform_indices = @transform_0, window_bounds = array<i64: 256, 1024>}, {transform_indices = @transform_1, window_bounds = array<i64: 256, 1024>}]} {
    %c0 = arith.constant 0 : index
    %c0_0 = arith.constant 0 : index
    %0 = vector.load %arg1[%c0, %c0_0] : memref<256x1024xf32, #tpu.memory_space<vmem>>, vector<256x1024xf32>
    %1 = arith.negf %0 : vector<256x1024xf32>
    %2 = math.exp %1 : vector<256x1024xf32>
    %cst = arith.constant 1.000000e+00 : f32
    %3 = vector.broadcast %cst : f32 to vector<256x1024xf32>
    %4 = arith.addf %3, %2 : vector<256x1024xf32>
    %5 = arith.divf %3, %4 : vector<256x1024xf32>
    %c0_1 = arith.constant 0 : index
    %c0_2 = arith.constant 0 : index
    %6 = vector.load %arg2[%c0_1, %c0_2] : memref<256x1024xf32, #tpu.memory_space<vmem>>, vector<256x1024xf32>
    tpu.vector_store %arg2[%c0_1, %c0_2], %5 {strides = array<i32>} : memref<256x1024xf32, #tpu.memory_space<vmem>>, vector<256x1024xf32>,
    return
  }
  func.func @transform_0(%arg0: i32) -> (i32, i32) {
    %c0_i32 = arith.constant 0 : i32
    %c0_i32_0 = arith.constant 0 : i32
    return %arg0, %c0_i32 : i32, i32
  }
  func.func @transform_1(%arg0: i32) -> (i32, i32) {
    %c0_i32 = arith.constant 0 : i32
    %c0_i32_0 = arith.constant 0 : i32
    return %arg0, %c0_i32 : i32, i32
  }
}

</mosaic_0001>

<bundles_post_ra>
// kernel: tpu_custom_call.1
= control target key start
LH: loop header
LB: loop body
LE: loop exit
PB: predicated region body
PF: predicated region fallthrough
CT: control target
= control target key end

     0   :  { %6 = vsyncpa [#allocation3], 0  ;;  %s4421_s0 = inlined_call_operand.hbm [shape: f32[512,1024], index: 0, kind: input, shape index: {}]   ;;  %s4422_s1 = inlined_call_operand.hbm [shape: f32[512,1024], index: 1, kind: output, shape index: {}]  }
   0x1   :  { %8 = vsyncpa [#allocation3 + $0x1], 0 }
   0x2   :  { %9 = vsyncpa [#allocation4], 0 }
   0x3   :  { %11 = vsyncpa [#allocation4 + $0x1], 0  ;;  %s3738_s6 = smov 0   ;;  %s3740_s7 = smov 0  }
   0x4   :  { %s3742_s8 = smov 0   ;;  %s3744_s9 = smov 0  }
   0x5 LB: > { %s3759_s10 = sadd.s32 4294967295, %s3720_s9   ;;  %s2274_s11 = sadd.s32 4294967294, %s3720_s9   ;;  %s3720_s9 = sphi %s3744_s9, %s4435_s9   ;;  %s3716_s8 = sphi %s3742_s8, %s4434_s8   ;;  %s3712_s7 = sphi %s3740_s7, %s4433_s7   ;;  %s3708_s6 = sphi %s3738_s6, %s4432_s6  }
   0x6   : > { %s3763_s12 = sadd.s32 1, %s3720_s9   ;;  %s24_s13 = sadd.s32 1, %s3716_s8 }
   0x7   : > { %s21_s14 = ssub.s32 %s3720_s9, %s3763_s12  ;;  %p31_p0 = scmp.ne.s32.totalorder %s3716_s8, %s3712_s7 }
   0x8   : > { %p22_p1 = scmp.eq.s32.totalorder %s21_s14, 0  ;;  %p32_p2 = scmp.eq.s32.totalorder %s3720_s9, 0 }
   0x9   : > { %p37_p3 = scmp.ne.s32.totalorder %s3712_s7, %s3708_s6  ;;  %p38_p4 = scmp.eq.s32.totalorder %s3759_s10, 0 }
   0xa   : > { %s3775_s15 = scalar_select %p22_p1, %s3716_s8, %s24_s13  }
   0xb   : > { %p3777_p5 = por %p32_p2, %p31_p0  ;;  %p3781_p6 = por %p38_p4, %p37_p3 }
   0xc   : > { %p61_p7 = scmp.eq.s32.totalorder %s3759_s10, 1  ;;  %p67_p8 = scmp.eq.s32.totalorder %s2274_s11, 1 }
   0xd   : > { %p2562_p10 = scmp.lt.s32.totalorder %s3720_s9, 2  ;;  %s87_s20 = sand.u32 1, %s3716_s8  }
   0xe   : > { %p3788_p11 = por %p61_p7, %p31_p0  ;;  %p3792_p12 = por %p67_p8, %p37_p3 }
   0xf   : > { %s2547_s21 = sshll.u32 %s3720_s9, 15  ;;  %s2277_s22 = sshll.u32 %s87_s20, 11 }
  0x10   : > { %s4426_s18 = scalar_select %p3788_p11, 1, 0 }
  0x11   : > { %s4427_s19 = scalar_select %p3792_p12, 1, 0 }
  0x12   : > { %s3801_s25 = scalar_lea.hbm %s4421_s0, %s2547_s21  ;;  %s91_s26 = scalar_lea.vmem [#allocation2], %s2277_s22 }
  0x13   : > { %s99_s27 = sshll.u32 %s91_s26, 4  ;;  %p3805_p13 = pnand %p2562_p10, %p3777_p5  ;;  %s3809_s27 = int_to_ptr.vmem [resolvable:$true] %s99_s27 }
  0x14   : > { %s3811_s29 = scalar_lea.sflag [#allocation3], %s87_s20  ;;  %s3624_s30 = scalar_lea.hbm %s3801_s25, 32768 }
  0x15   : > { %p3625_p0 = scmp.ne.s32.totalorder %s3801_s25, %s3624_s30  ;;  %p3626_p1 = pneg %p3805_p13 }
  0x16   : > { %s3629_s4 = scalar_lea.hbm %s4421_s0, 65536  ;;  %p3630_p4 = scmp.lt.u32.totalorder %s3801_s25, %s4421_s0 }
  0x17   : > { %p3627_p2 = pnand %p3626_p1, %p3625_p0  ;;  %p3631_p5 = scmp.lt.u32.totalorder %s3629_s4, %s3624_s30 }
  0x18   : > { %p3633_p8 = scmp.lt.u32.totalorder %s3624_s30, %s3801_s25 }
  0x19   : > { %p3628_p3 = pneg %p3627_p2  ;;  %p3632_p7 = por %p3631_p5, %p3630_p4 }
  0x1b   : > { %p3634_p10 = por %p3633_p8, %p3632_p7 }
  0x1d   : > { %p3635_p9 = pnand %p3634_p10, %p3628_p3 }
  0x1f   : > { %3638 = shalt.err (!%p3635_p9)
}
  0x20   : > { %s3639_s13 = scalar_lea.vmem %s3809_s27, 32768  ;;  %s3722_s14 = smov [#allocation2]  }
  0x21   : > { %p3640_p0 = scmp.ne.s32.totalorder %s3809_s27, %s3639_s13  ;;  %s3644_s16 = sshll.u32 %s3722_s14, 4  ;;  %s3645_s16 = int_to_ptr.vmem [resolvable:$false] %s3644_s16 }
  0x22   : > { %s3646_s20 = scalar_lea.vmem %s3645_s16, 65536  ;;  %p3647_p11 = scmp.lt.s32.totalorder %s3809_s27, %s3645_s16 }
  0x23   : > { %p3642_p2 = pnand %p3640_p0, %p3626_p1  ;;  %p3648_p4 = scmp.lt.s32.totalorder %s3646_s20, %s3639_s13 }
  0x25   : > { %p3643_p12 = pneg %p3642_p2  ;;  %p3649_p5 = por %p3648_p4, %p3647_p11 }
  0x27   : > { %p3650_p7 = pnand %p3649_p5, %p3643_p12 }
  0x29   : > { %3653 = shalt.err (!%p3650_p7)
}
  0x2a   : > { %s3723_s21 = smov 1024   ;;  %s3724_s22 = smov 64  }
  0x2b   : > { %2557 = dma.hbm_to_vmem [thread:$0]  (!%p3805_p13), %s3801_s25, 32768, %s3809_s27, %s3811_s29, %s3723_s21, %s3723_s21, %s3724_s22  }
  0x2c   : > { %p2281_p9 = scmp.ge.s32.totalorder %s3720_s9, 1  ;;  %p107_p1 = scmp.lt.s32.totalorder %s3720_s9, 3 }
  0x2e   : > { %p108_p3 = pnand %p2281_p9, %p107_p1 }
  0x2f   : > { %s3842_s23 = sand.u32 (!%p108_p3), 1, %s3712_s7  }
  0x30   : > { %111 = sbr.rel (%p108_p3) target bundleno = 600 (0x258), region = 24  ;;  %s2282_s24 = sshll.u32 (!%p108_p3), %s3842_s23, 11 }
  0x31   : > { %s114_s26 = scalar_lea.sflag (!%p108_p3), [#allocation3], %s3842_s23  ;;  %s3848_s30 = scalar_lea.vmem (!%p108_p3), [#allocation2], %s2282_s24 }
  0x37   : > { %3699 = dma.done.wait (%p3781_p6), %s114_s26, 32768  }
  0x38   : > { %3701 = vsyncadd (%p3781_p6), %s114_s26, 4294934528  ;;  %v138_v0 = vld [vmem:[%s3848_s30] sm:$0xff]  ;;  %v139_v1 = vld [vmem:[%s3848_s30 + $0x8] sm:$0xff]  ;;  %s3874_s17 = scalar_lea.vmem [#allocation5], %s2282_s24  ;;  %s2549_s25 = sshll.u32 %s3759_s10, 15 }
  0x39   : > { %v140_v2 = vld [vmem:[%s3848_s30 + $0x10] sm:$0xff]  ;;  %v2284_v3 = vmul.f32 -1.442695, %v138_v0  ;;  %v2285_v4 = vmul.f32 -1.442695, %v139_v1  ;;  %v141_v6 = vld [vmem:[%s3848_s30 + $0x18] sm:$0xff]  ;;  %s4372_s2 = scalar_lea.hbm %s4422_s1, %s2549_s25 }
  0x3a   : > { %v2286_v5 = vmul.f32 -1.442695, %v140_v2  ;;  %v142_v7 = vld [vmem:[%s3848_s30 + $0x20] sm:$0xff]  ;;  %v143_v8 = vld [vmem:[%s3848_s30 + $0x28] sm:$0xff]  ;;  %v2287_v9 = vmul.f32 -1.442695, %v141_v6 }
  0x3b   : > { %2600 = vpow2.f32 %v2284_v3  ;;  %v2288_v10 = vmul.f32 -1.442695, %v142_v7  ;;  %v2289_v11 = vmul.f32 -1.442695, %v143_v8  ;;  %v144_v12 = vld [vmem:[%s3848_s30 + $0x30] sm:$0xff]  ;;  %v145_v13 = vld [vmem:[%s3848_s30 + $0x38] sm:$0xff] }
  0x3c   : > { %2602 = vpow2.f32 %v2285_v4  ;;  %v146_v14 = vld [vmem:[%s3848_s30 + $0x40] sm:$0xff]  ;;  %v2290_v15 = vmul.f32 -1.442695, %v144_v12  ;;  %v2291_v16 = vmul.f32 -1.442695, %v145_v13  ;;  %v147_v17 = vld [vmem:[%s3848_s30 + $0x48] sm:$0xff] }
  0x3d   : > { %2604 = vpow2.f32 %v2286_v5  ;;  %v148_v18 = vld [vmem:[%s3848_s30 + $0x50] sm:$0xff]  ;;  %v2292_v19 = vmul.f32 -1.442695, %v146_v14  ;;  %v149_v20 = vld [vmem:[%s3848_s30 + $0x58] sm:$0xff]  ;;  %v2293_v21 = vmul.f32 -1.442695, %v147_v17 }
  0x3e   : > { %2606 = vpow2.f32 %v2287_v9  ;;  %v150_v22 = vld [vmem:[%s3848_s30 + $0x60] sm:$0xff]  ;;  %v2294_v23 = vmul.f32 -1.442695, %v148_v18  ;;  %v2295_v24 = vmul.f32 -1.442695, %v149_v20  ;;  %v151_v45 = vld [vmem:[%s3848_s30 + $0x68] sm:$0xff] }
  0x3f   : > { %2608 = vpow2.f32 %v2288_v10  ;;  %v2296_v25 = vmul.f32 -1.442695, %v150_v22  ;;  %v152_v48 = vld [vmem:[%s3848_s30 + $0x70] sm:$0xff]  ;;  %v153_v51 = vld [vmem:[%s3848_s30 + $0x78] sm:$0xff]  ;;  %v2297_v54 = vmul.f32 -1.442695, %v151_v45 }
  0x40   : > { %2610 = vpow2.f32 %v2289_v11  ;;  %v154_v55 = vld [vmem:[%s3848_s30 + $0x80] sm:$0xff]  ;;  %v2298_v58 = vmul.f32 -1.442695, %v152_v48  ;;  %v155_v59 = vld [vmem:[%s3848_s30 + $0x88] sm:$0xff]  ;;  %v2299_v61 = vmul.f32 -1.442695, %v153_v51 }
  0x41   : > { %2612 = vpow2.f32 %v2290_v15  ;;  %v156_v62 = vld [vmem:[%s3848_s30 + $0x90] sm:$0xff]  ;;  %v2300_v0 = vmul.f32 -1.442695, %v154_v55  ;;  %v157_v1 = vld [vmem:[%s3848_s30 + $0x98] sm:$0xff]  ;;  %v2301_v3 = vmul.f32 -1.442695, %v155_v59 }
  0x42   : > { %2614 = vpow2.f32 %v2291_v16  ;;  %v158_v4 = vld [vmem:[%s3848_s30 + $0xa0] sm:$0xff]  ;;  %v2302_v6 = vmul.f32 -1.442695, %v156_v62  ;;  %v159_v7 = vld [vmem:[%s3848_s30 + $0xa8] sm:$0xff]  ;;  %v2303_v9 = vmul.f32 -1.442695, %v157_v1 }
  0x43   : > { %2616 = vpow2.f32 %v2292_v19  ;;  %v160_v10 = vld [vmem:[%s3848_s30 + $0xb0] sm:$0xff]  ;;  %v2304_v12 = vmul.f32 -1.442695, %v158_v4  ;;  %v161_v13 = vld [vmem:[%s3848_s30 + $0xb8] sm:$0xff]  ;;  %v2305_v15 = vmul.f32 -1.442695, %v159_v7 }
  0x44   : > { %2618 = vpow2.f32 %v2293_v21  ;;  %v162_v16 = vld [vmem:[%s3848_s30 + $0xc0] sm:$0xff]  ;;  %v2306_v18 = vmul.f32 -1.442695, %v160_v10  ;;  %v163_v19 = vld [vmem:[%s3848_s30 + $0xc8] sm:$0xff]  ;;  %v2307_v21 = vmul.f32 -1.442695, %v161_v13 }
  0x45   : > { %v2601_v26 = vpop.eup %2600  ;;  %2620 = vpow2.f32 %v2294_v23  ;;  %v2308_v23 = vmul.f32 -1.442695, %v162_v16  ;;  %s2201_s27 = sshll.u32 %s3874_s17, 4  ;;  %s2187_s10 = scalar_lea.sflag [#allocation4], %s3842_s23  ;;  %s4374_s27 = int_to_ptr.vmem [resolvable:$true] %s2201_s27 }
  0x46   : > { %v2603_v27 = vpop.eup %2602  ;;  %v1162_v28 = vadd.f32 1.0, %v2601_v26  ;;  %2622 = vpow2.f32 %v2295_v24  ;;  %s3654_s3 = scalar_lea.vmem %s4374_s27, 32768  ;;  %p4429_p11 = scmp.ne.s32.totalorder %s4426_s18, 0 }
  0x47   : > { %v2605_v29 = vpop.eup %2604  ;;  %v1163_v30 = vadd.f32 1.0, %v2603_v27  ;;  %2624 = vpow2.f32 %v2296_v25  ;;  %v2309_v25 = vmul.f32 -1.442695, %v163_v19  ;;  %p3655_p6 = scmp.ne.s32.totalorder %s4374_s27, %s3654_s3  ;;  %s3725_s4 = smov [#allocation5]  }
  0x48   : > { %v2607_v31 = vpop.eup %2606  ;;  %2626 = vrcp.f32 %v1162_v28  ;;  %v1164_v32 = vadd.f32 1.0, %v2605_v29  ;;  %s3658_s5 = sshll.u32 %s3725_s4, 4  ;;  %s3659_s5 = int_to_ptr.vmem [resolvable:$false] %s3658_s5 }
  0x49   : > { %v2609_v33 = vpop.eup %2608  ;;  %2628 = vrcp.f32 %v1163_v30  ;;  %v1165_v34 = vadd.f32 1.0, %v2607_v31  ;;  %p3656_p12 = pnand %p3655_p6, %p4429_p11  ;;  %s3660_s11 = scalar_lea.vmem %s3659_s5, 65536 }
  0x4a   : > { %v2611_v35 = vpop.eup %2610  ;;  %2630 = vrcp.f32 %v1164_v32  ;;  %v1166_v36 = vadd.f32 1.0, %v2609_v33  ;;  %p3661_p8 = scmp.lt.s32.totalorder %s4374_s27, %s3659_s5  ;;  %p3662_p10 = scmp.lt.s32.totalorder %s3660_s11, %s3654_s3 }
  0x4b   : > { %v2613_v37 = vpop.eup %2612  ;;  %2632 = vrcp.f32 %v1165_v34  ;;  %v1167_v38 = vadd.f32 1.0, %v2611_v35  ;;  %p3657_p13 = pneg %p3656_p12 }
  0x4c   : > { %v2615_v39 = vpop.eup %2614  ;;  %2634 = vrcp.f32 %v1166_v36  ;;  %v1168_v40 = vadd.f32 1.0, %v2613_v37  ;;  %p3663_p0 = por %p3662_p10, %p3661_p8 }
  0x4d   : > { %v2617_v41 = vpop.eup %2616  ;;  %2636 = vrcp.f32 %v1167_v38  ;;  %v1169_v42 = vadd.f32 1.0, %v2615_v39 }
  0x4e   : > { %v2619_v43 = vpop.eup %2618  ;;  %2638 = vrcp.f32 %v1168_v40  ;;  %v1170_v44 = vadd.f32 1.0, %v2617_v41  ;;  %p3664_p2 = pnand %p3663_p0, %p3657_p13 }
  0x4f   : > { %v2621_v46 = vpop.eup %2620  ;;  %2640 = vrcp.f32 %v1169_v42  ;;  %v1171_v47 = vadd.f32 1.0, %v2619_v43 }
  0x50   : > { %v2623_v49 = vpop.eup %2622  ;;  %2642 = vrcp.f32 %v1170_v44  ;;  %v1172_v50 = vadd.f32 1.0, %v2621_v46  ;;  %v164_v46 = vld [vmem:[%s3848_s30 + $0xd0] sm:$0xff] }
  0x51   : > { %v2625_v52 = vpop.eup %2624  ;;  %2644 = vrcp.f32 %v1171_v47  ;;  %v1173_v53 = vadd.f32 1.0, %v2623_v49  ;;  %v165_v49 = vld [vmem:[%s3848_s30 + $0xd8] sm:$0xff]  ;;  %v2310_v55 = vmul.f32 -1.442695, %v164_v46 }
  0x52   : > { %v2627_v56 = vpop.eup %2626  ;;  %2646 = vrcp.f32 %v1172_v50  ;;  %v1174_v57 = vadd.f32 1.0, %v2625_v52  ;;  %v166_v52 = vld [vmem:[%s3848_s30 + $0xe0] sm:$0xff]  ;;  %v2311_v59 = vmul.f32 -1.442695, %v165_v49 }
  0x53   : > { %v2629_v60 = vpop.eup %2628  ;;  %1930 = vst [vmem:[%s3874_s17] sm:$0xff] %v2627_v56  ;;  %2648 = vrcp.f32 %v1173_v53  ;;  %v167_v56 = vld [vmem:[%s3848_s30 + $0xe8] sm:$0xff]  ;;  %v2312_v62 = vmul.f32 -1.442695, %v166_v52 }
  0x54   : > { %v2631_v63 = vpop.eup %2630  ;;  %1931 = vst [vmem:[%s3874_s17 + $0x8] sm:$0xff] %v2629_v60  ;;  %2650 = vrcp.f32 %v1174_v57  ;;  %v168_v60 = vld [vmem:[%s3848_s30 + $0xf0] sm:$0xff]  ;;  %v2313_v1 = vmul.f32 -1.442695, %v167_v56 }
  0x55   : > { %v2633_v2 = vpop.eup %2632  ;;  %1932 = vst [vmem:[%s3874_s17 + $0x10] sm:$0xff] %v2631_v63  ;;  %2652 = vpow2.f32 %v2297_v54  ;;  %v169_v63 = vld [vmem:[%s3848_s30 + $0xf8] sm:$0xff]  ;;  %v2314_v4 = vmul.f32 -1.442695, %v168_v60 }
  0x56   : > { %v2635_v5 = vpop.eup %2634  ;;  %1933 = vst [vmem:[%s3874_s17 + $0x18] sm:$0xff] %v2633_v2  ;;  %2654 = vpow2.f32 %v2298_v58  ;;  %v170_v2 = vld [vmem:[%s3848_s30 + $0x100] sm:$0xff]  ;;  %v2315_v7 = vmul.f32 -1.442695, %v169_v63 }
  0x57   : > { %v2637_v8 = vpop.eup %2636  ;;  %1934 = vst [vmem:[%s3874_s17 + $0x20] sm:$0xff] %v2635_v5  ;;  %2656 = vpow2.f32 %v2299_v61  ;;  %v171_v5 = vld [vmem:[%s3848_s30 + $0x108] sm:$0xff]  ;;  %v2316_v10 = vmul.f32 -1.442695, %v170_v2 }
  0x58   : > { %v2639_v11 = vpop.eup %2638  ;;  %1935 = vst [vmem:[%s3874_s17 + $0x28] sm:$0xff] %v2637_v8  ;;  %2658 = vpow2.f32 %v2300_v0  ;;  %v172_v8 = vld [vmem:[%s3848_s30 + $0x110] sm:$0xff]  ;;  %v2317_v13 = vmul.f32 -1.442695, %v171_v5 }
  0x59   : > { %v2641_v14 = vpop.eup %2640  ;;  %1936 = vst [vmem:[%s3874_s17 + $0x30] sm:$0xff] %v2639_v11  ;;  %2660 = vpow2.f32 %v2301_v3  ;;  %v173_v11 = vld [vmem:[%s3848_s30 + $0x118] sm:$0xff]  ;;  %v2318_v16 = vmul.f32 -1.442695, %v172_v8 }
  0x5a   : > { %v2643_v17 = vpop.eup %2642  ;;  %1937 = vst [vmem:[%s3874_s17 + $0x38] sm:$0xff] %v2641_v14  ;;  %2662 = vpow2.f32 %v2302_v6  ;;  %v174_v14 = vld [vmem:[%s3848_s30 + $0x120] sm:$0xff]  ;;  %v2319_v19 = vmul.f32 -1.442695, %v173_v11 }
  0x5b   : > { %v2645_v20 = vpop.eup %2644  ;;  %1938 = vst [vmem:[%s3874_s17 + $0x40] sm:$0xff] %v2643_v17  ;;  %2664 = vpow2.f32 %v2303_v9  ;;  %v175_v17 = vld [vmem:[%s3848_s30 + $0x128] sm:$0xff] }
  0x5c   : > { %v2647_v22 = vpop.eup %2646  ;;  %1939 = vst [vmem:[%s3874_s17 + $0x48] sm:$0xff] %v2645_v20  ;;  %2666 = vpow2.f32 %v2304_v12  ;;  %v176_v20 = vld [vmem:[%s3848_s30 + $0x130] sm:$0xff] }
  0x5d   : > { %v2649_v24 = vpop.eup %2648  ;;  %1940 = vst [vmem:[%s3874_s17 + $0x50] sm:$0xff] %v2647_v22  ;;  %2668 = vpow2.f32 %v2305_v15  ;;  %v2320_v22 = vmul.f32 -1.442695, %v174_v14 }
  0x5e   : > { %v2651_v26 = vpop.eup %2650  ;;  %1941 = vst [vmem:[%s3874_s17 + $0x58] sm:$0xff] %v2649_v24  ;;  %2670 = vpow2.f32 %v2306_v18  ;;  %v2321_v24 = vmul.f32 -1.442695, %v175_v17 }
  0x5f   : > { %v2653_v27 = vpop.eup %2652  ;;  %1942 = vst [vmem:[%s3874_s17 + $0x60] sm:$0xff] %v2651_v26  ;;  %2672 = vpow2.f32 %v2307_v21  ;;  %v2322_v26 = vmul.f32 -1.442695, %v176_v20 }
  0x60   : > { %v2655_v28 = vpop.eup %2654  ;;  %v1175_v29 = vadd.f32 1.0, %v2653_v27  ;;  %2674 = vpow2.f32 %v2308_v23 }
  0x61   : > { %v2657_v30 = vpop.eup %2656  ;;  %v1176_v31 = vadd.f32 1.0, %v2655_v28  ;;  %2676 = vpow2.f32 %v2309_v25 }
  0x62   : > { %v2659_v32 = vpop.eup %2658  ;;  %2678 = vrcp.f32 %v1175_v29  ;;  %v1177_v33 = vadd.f32 1.0, %v2657_v30 }
  0x63   : > { %v2661_v34 = vpop.eup %2660  ;;  %2680 = vrcp.f32 %v1176_v31  ;;  %v1178_v35 = vadd.f32 1.0, %v2659_v32 }
  0x64   : > { %v2663_v36 = vpop.eup %2662  ;;  %2682 = vrcp.f32 %v1177_v33  ;;  %v1179_v37 = vadd.f32 1.0, %v2661_v34 }
  0x65   : > { %v2665_v38 = vpop.eup %2664  ;;  %2684 = vrcp.f32 %v1178_v35  ;;  %v1180_v39 = vadd.f32 1.0, %v2663_v36 }
  0x66   : > { %v2667_v40 = vpop.eup %2666  ;;  %2686 = vrcp.f32 %v1179_v37  ;;  %v1181_v41 = vadd.f32 1.0, %v2665_v38 }
  0x67   : > { %v2669_v42 = vpop.eup %2668  ;;  %2688 = vrcp.f32 %v1180_v39  ;;  %v1182_v43 = vadd.f32 1.0, %v2667_v40 }
  0x68   : > { %v2671_v44 = vpop.eup %2670  ;;  %2690 = vrcp.f32 %v1181_v41  ;;  %v1183_v45 = vadd.f32 1.0, %v2669_v42 }
  0x69   : > { %v2673_v47 = vpop.eup %2672  ;;  %2692 = vrcp.f32 %v1182_v43  ;;  %v1184_v48 = vadd.f32 1.0, %v2671_v44 }
  0x6a   : > { %v2675_v50 = vpop.eup %2674  ;;  %2694 = vrcp.f32 %v1183_v45  ;;  %v1185_v51 = vadd.f32 1.0, %v2673_v47  ;;  %v177_v47 = vld [vmem:[%s3848_s30 + $0x138] sm:$0xff] }
  0x6b   : > { %v2677_v53 = vpop.eup %2676  ;;  %2696 = vrcp.f32 %v1184_v48  ;;  %v1186_v54 = vadd.f32 1.0, %v2675_v50  ;;  %v178_v50 = vld [vmem:[%s3848_s30 + $0x140] sm:$0xff]  ;;  %v2323_v56 = vmul.f32 -1.442695, %v177_v47 }
  0x6c   : > { %v2679_v57 = vpop.eup %2678  ;;  %2698 = vrcp.f32 %v1185_v51  ;;  %v1187_v58 = vadd.f32 1.0, %v2677_v53  ;;  %v179_v53 = vld [vmem:[%s3848_s30 + $0x148] sm:$0xff]  ;;  %v2324_v60 = vmul.f32 -1.442695, %v178_v50 }
  0x6d   : > { %v2681_v61 = vpop.eup %2680  ;;  %1943 = vst [vmem:[%s3874_s17 + $0x68] sm:$0xff] %v2679_v57  ;;  %2700 = vrcp.f32 %v1186_v54  ;;  %v180_v57 = vld [vmem:[%s3848_s30 + $0x150] sm:$0xff]  ;;  %v2325_v63 = vmul.f32 -1.442695, %v179_v53 }
  0x6e   : > { %v2683_v0 = vpop.eup %2682  ;;  %1944 = vst [vmem:[%s3874_s17 + $0x70] sm:$0xff] %v2681_v61  ;;  %2702 = vrcp.f32 %v1187_v58  ;;  %v181_v61 = vld [vmem:[%s3848_s30 + $0x158] sm:$0xff]  ;;  %v2326_v2 = vmul.f32 -1.442695, %v180_v57 }
  0x6f   : > { %v2685_v3 = vpop.eup %2684  ;;  %1945 = vst [vmem:[%s3874_s17 + $0x78] sm:$0xff] %v2683_v0  ;;  %2704 = vpow2.f32 %v2310_v55  ;;  %v182_v0 = vld [vmem:[%s3848_s30 + $0x160] sm:$0xff]  ;;  %v2327_v5 = vmul.f32 -1.442695, %v181_v61 }
  0x70   : > { %v2687_v6 = vpop.eup %2686  ;;  %1946 = vst [vmem:[%s3874_s17 + $0x80] sm:$0xff] %v2685_v3  ;;  %2706 = vpow2.f32 %v2311_v59  ;;  %v183_v3 = vld [vmem:[%s3848_s30 + $0x168] sm:$0xff]  ;;  %v2328_v8 = vmul.f32 -1.442695, %v182_v0 }
  0x71   : > { %v2689_v9 = vpop.eup %2688  ;;  %1947 = vst [vmem:[%s3874_s17 + $0x88] sm:$0xff] %v2687_v6  ;;  %2708 = vpow2.f32 %v2312_v62  ;;  %v184_v6 = vld [vmem:[%s3848_s30 + $0x170] sm:$0xff]  ;;  %v2329_v11 = vmul.f32 -1.442695, %v183_v3 }
  0x72   : > { %v2691_v12 = vpop.eup %2690  ;;  %1948 = vst [vmem:[%s3874_s17 + $0x90] sm:$0xff] %v2689_v9  ;;  %2710 = vpow2.f32 %v2313_v1  ;;  %v185_v9 = vld [vmem:[%s3848_s30 + $0x178] sm:$0xff]  ;;  %v2330_v14 = vmul.f32 -1.442695, %v184_v6 }
  0x73   : > { %v2693_v15 = vpop.eup %2692  ;;  %1949 = vst [vmem:[%s3874_s17 + $0x98] sm:$0xff] %v2691_v12  ;;  %2712 = vpow2.f32 %v2314_v4  ;;  %v186_v12 = vld [vmem:[%s3848_s30 + $0x180] sm:$0xff]  ;;  %v2331_v17 = vmul.f32 -1.442695, %v185_v9 }
  0x74   : > { %v2695_v18 = vpop.eup %2694  ;;  %1950 = vst [vmem:[%s3874_s17 + $0xa0] sm:$0xff] %v2693_v15  ;;  %2714 = vpow2.f32 %v2315_v7  ;;  %v187_v15 = vld [vmem:[%s3848_s30 + $0x188] sm:$0xff]  ;;  %v2332_v20 = vmul.f32 -1.442695, %v186_v12 }
  0x75   : > { %v2697_v21 = vpop.eup %2696  ;;  %1951 = vst [vmem:[%s3874_s17 + $0xa8] sm:$0xff] %v2695_v18  ;;  %2716 = vpow2.f32 %v2316_v10  ;;  %v188_v18 = vld [vmem:[%s3848_s30 + $0x190] sm:$0xff] }
  0x76   : > { %v2699_v23 = vpop.eup %2698  ;;  %1952 = vst [vmem:[%s3874_s17 + $0xb0] sm:$0xff] %v2697_v21  ;;  %2718 = vpow2.f32 %v2317_v13  ;;  %v189_v21 = vld [vmem:[%s3848_s30 + $0x198] sm:$0xff] }
  0x77   : > { %v2701_v25 = vpop.eup %2700  ;;  %1953 = vst [vmem:[%s3874_s17 + $0xb8] sm:$0xff] %v2699_v23  ;;  %2720 = vpow2.f32 %v2318_v16  ;;  %v2333_v23 = vmul.f32 -1.442695, %v187_v15 }
  0x78   : > { %v2703_v27 = vpop.eup %2702  ;;  %1954 = vst [vmem:[%s3874_s17 + $0xc0] sm:$0xff] %v2701_v25  ;;  %2722 = vpow2.f32 %v2319_v19  ;;  %v2334_v25 = vmul.f32 -1.442695, %v188_v18 }
  0x79   : > { %v2705_v28 = vpop.eup %2704  ;;  %1955 = vst [vmem:[%s3874_s17 + $0xc8] sm:$0xff] %v2703_v27  ;;  %2724 = vpow2.f32 %v2320_v22  ;;  %v2335_v27 = vmul.f32 -1.442695, %v189_v21 }
  0x7a   : > { %v2707_v29 = vpop.eup %2706  ;;  %v1188_v30 = vadd.f32 1.0, %v2705_v28  ;;  %2726 = vpow2.f32 %v2321_v24 }
  0x7b   : > { %v2709_v31 = vpop.eup %2708  ;;  %v1189_v32 = vadd.f32 1.0, %v2707_v29  ;;  %2728 = vpow2.f32 %v2322_v26 }
  0x7c   : > { %v2711_v33 = vpop.eup %2710  ;;  %2730 = vrcp.f32 %v1188_v30  ;;  %v1190_v34 = vadd.f32 1.0, %v2709_v31 }
  0x7d   : > { %v2713_v35 = vpop.eup %2712  ;;  %2732 = vrcp.f32 %v1189_v32  ;;  %v1191_v36 = vadd.f32 1.0, %v2711_v33 }
  0x7e   : > { %v2715_v37 = vpop.eup %2714  ;;  %2734 = vrcp.f32 %v1190_v34  ;;  %v1192_v38 = vadd.f32 1.0, %v2713_v35 }
  0x7f   : > { %v2717_v39 = vpop.eup %2716  ;;  %2736 = vrcp.f32 %v1191_v36  ;;  %v1193_v40 = vadd.f32 1.0, %v2715_v37 }
  0x80   : > { %v2719_v41 = vpop.eup %2718  ;;  %2738 = vrcp.f32 %v1192_v38  ;;  %v1194_v42 = vadd.f32 1.0, %v2717_v39 }
  0x81   : > { %v2721_v43 = vpop.eup %2720  ;;  %2740 = vrcp.f32 %v1193_v40  ;;  %v1195_v44 = vadd.f32 1.0, %v2719_v41 }
  0x82   : > { %v2723_v45 = vpop.eup %2722  ;;  %2742 = vrcp.f32 %v1194_v42  ;;  %v1196_v46 = vadd.f32 1.0, %v2721_v43 }
  0x83   : > { %v2725_v48 = vpop.eup %2724  ;;  %2744 = vrcp.f32 %v1195_v44  ;;  %v1197_v49 = vadd.f32 1.0, %v2723_v45 }
  0x84   : > { %v2727_v51 = vpop.eup %2726  ;;  %2746 = vrcp.f32 %v1196_v46  ;;  %v1198_v52 = vadd.f32 1.0, %v2725_v48  ;;  %v190_v48 = vld [vmem:[%s3848_s30 + $0x1a0] sm:$0xff] }
  0x85   : > { %v2729_v54 = vpop.eup %2728  ;;  %2748 = vrcp.f32 %v1197_v49  ;;  %v1199_v55 = vadd.f32 1.0, %v2727_v51  ;;  %v191_v51 = vld [vmem:[%s3848_s30 + $0x1a8] sm:$0xff]  ;;  %v2336_v57 = vmul.f32 -1.442695, %v190_v48 }
  0x86   : > { %v2731_v58 = vpop.eup %2730  ;;  %2750 = vrcp.f32 %v1198_v52  ;;  %v1200_v59 = vadd.f32 1.0, %v2729_v54  ;;  %v192_v54 = vld [vmem:[%s3848_s30 + $0x1b0] sm:$0xff]  ;;  %v2337_v61 = vmul.f32 -1.442695, %v191_v51 }
  0x87   : > { %v2733_v62 = vpop.eup %2732  ;;  %1956 = vst [vmem:[%s3874_s17 + $0xd0] sm:$0xff] %v2731_v58  ;;  %2752 = vrcp.f32 %v1199_v55  ;;  %v193_v58 = vld [vmem:[%s3848_s30 + $0x1b8] sm:$0xff]  ;;  %v2338_v0 = vmul.f32 -1.442695, %v192_v54 }
  0x88   : > { %v2735_v1 = vpop.eup %2734  ;;  %1957 = vst [vmem:[%s3874_s17 + $0xd8] sm:$0xff] %v2733_v62  ;;  %2754 = vrcp.f32 %v1200_v59  ;;  %v194_v62 = vld [vmem:[%s3848_s30 + $0x1c0] sm:$0xff]  ;;  %v2339_v3 = vmul.f32 -1.442695, %v193_v58 }
  0x89   : > { %v2737_v4 = vpop.eup %2736  ;;  %1958 = vst [vmem:[%s3874_s17 + $0xe0] sm:$0xff] %v2735_v1  ;;  %2756 = vpow2.f32 %v2323_v56  ;;  %v195_v1 = vld [vmem:[%s3848_s30 + $0x1c8] sm:$0xff]  ;;  %v2340_v6 = vmul.f32 -1.442695, %v194_v62 }
  0x8a   : > { %v2739_v7 = vpop.eup %2738  ;;  %1959 = vst [vmem:[%s3874_s17 + $0xe8] sm:$0xff] %v2737_v4  ;;  %2758 = vpow2.f32 %v2324_v60  ;;  %v196_v4 = vld [vmem:[%s3848_s30 + $0x1d0] sm:$0xff]  ;;  %v2341_v9 = vmul.f32 -1.442695, %v195_v1 }
  0x8b   : > { %v2741_v10 = vpop.eup %2740  ;;  %1960 = vst [vmem:[%s3874_s17 + $0xf0] sm:$0xff] %v2739_v7  ;;  %2760 = vpow2.f32 %v2325_v63  ;;  %v197_v7 = vld [vmem:[%s3848_s30 + $0x1d8] sm:$0xff]  ;;  %v2342_v12 = vmul.f32 -1.442695, %v196_v4 }
  0x8c   : > { %v2743_v13 = vpop.eup %2742  ;;  %1961 = vst [vmem:[%s3874_s17 + $0xf8] sm:$0xff] %v2741_v10  ;;  %2762 = vpow2.f32 %v2326_v2  ;;  %v198_v10 = vld [vmem:[%s3848_s30 + $0x1e0] sm:$0xff]  ;;  %v2343_v15 = vmul.f32 -1.442695, %v197_v7 }
  0x8d   : > { %v2745_v16 = vpop.eup %2744  ;;  %1962 = vst [vmem:[%s3874_s17 + $0x100] sm:$0xff] %v2743_v13  ;;  %2764 = vpow2.f32 %v2327_v5  ;;  %v199_v13 = vld [vmem:[%s3848_s30 + $0x1e8] sm:$0xff]  ;;  %v2344_v18 = vmul.f32 -1.442695, %v198_v10 }
  0x8e   : > { %v2747_v19 = vpop.eup %2746  ;;  %1963 = vst [vmem:[%s3874_s17 + $0x108] sm:$0xff] %v2745_v16  ;;  %2766 = vpow2.f32 %v2328_v8  ;;  %v200_v16 = vld [vmem:[%s3848_s30 + $0x1f0] sm:$0xff]  ;;  %v2345_v21 = vmul.f32 -1.442695, %v199_v13 }
  0x8f   : > { %v2749_v22 = vpop.eup %2748  ;;  %1964 = vst [vmem:[%s3874_s17 + $0x110] sm:$0xff] %v2747_v19  ;;  %2768 = vpow2.f32 %v2329_v11  ;;  %v201_v19 = vld [vmem:[%s3848_s30 + $0x1f8] sm:$0xff] }
  0x90   : > { %v2751_v24 = vpop.eup %2750  ;;  %1965 = vst [vmem:[%s3874_s17 + $0x118] sm:$0xff] %v2749_v22  ;;  %2770 = vpow2.f32 %v2330_v14  ;;  %v202_v22 = vld [vmem:[%s3848_s30 + $0x200] sm:$0xff] }
  0x91   : > { %v2753_v26 = vpop.eup %2752  ;;  %1966 = vst [vmem:[%s3874_s17 + $0x120] sm:$0xff] %v2751_v24  ;;  %2772 = vpow2.f32 %v2331_v17  ;;  %v2346_v24 = vmul.f32 -1.442695, %v200_v16 }
  0x92   : > { %v2755_v28 = vpop.eup %2754  ;;  %1967 = vst [vmem:[%s3874_s17 + $0x128] sm:$0xff] %v2753_v26  ;;  %2774 = vpow2.f32 %v2332_v20  ;;  %v2347_v26 = vmul.f32 -1.442695, %v201_v19 }
  0x93   : > { %v2757_v29 = vpop.eup %2756  ;;  %1968 = vst [vmem:[%s3874_s17 + $0x130] sm:$0xff] %v2755_v28  ;;  %2776 = vpow2.f32 %v2333_v23  ;;  %v2348_v28 = vmul.f32 -1.442695, %v202_v22 }
  0x94   : > { %v2759_v30 = vpop.eup %2758  ;;  %v1201_v31 = vadd.f32 1.0, %v2757_v29  ;;  %2778 = vpow2.f32 %v2334_v25 }
  0x95   : > { %v2761_v32 = vpop.eup %2760  ;;  %v1202_v33 = vadd.f32 1.0, %v2759_v30  ;;  %2780 = vpow2.f32 %v2335_v27 }
  0x96   : > { %v2763_v34 = vpop.eup %2762  ;;  %2782 = vrcp.f32 %v1201_v31  ;;  %v1203_v35 = vadd.f32 1.0, %v2761_v32 }
  0x97   : > { %v2765_v36 = vpop.eup %2764  ;;  %2784 = vrcp.f32 %v1202_v33  ;;  %v1204_v37 = vadd.f32 1.0, %v2763_v34 }
  0x98   : > { %v2767_v38 = vpop.eup %2766  ;;  %2786 = vrcp.f32 %v1203_v35  ;;  %v1205_v39 = vadd.f32 1.0, %v2765_v36 }
  0x99   : > { %v2769_v40 = vpop.eup %2768  ;;  %2788 = vrcp.f32 %v1204_v37  ;;  %v1206_v41 = vadd.f32 1.0, %v2767_v38 }
  0x9a   : > { %v2771_v42 = vpop.eup %2770  ;;  %2790 = vrcp.f32 %v1205_v39  ;;  %v1207_v43 = vadd.f32 1.0, %v2769_v40 }
  0x9b   : > { %v2773_v44 = vpop.eup %2772  ;;  %2792 = vrcp.f32 %v1206_v41  ;;  %v1208_v45 = vadd.f32 1.0, %v2771_v42 }
  0x9c   : > { %v2775_v46 = vpop.eup %2774  ;;  %2794 = vrcp.f32 %v1207_v43  ;;  %v1209_v47 = vadd.f32 1.0, %v2773_v44 }
  0x9d   : > { %v2777_v49 = vpop.eup %2776  ;;  %2796 = vrcp.f32 %v1208_v45  ;;  %v1210_v50 = vadd.f32 1.0, %v2775_v46 }
  0x9e   : > { %v2779_v52 = vpop.eup %2778  ;;  %2798 = vrcp.f32 %v1209_v47  ;;  %v1211_v53 = vadd.f32 1.0, %v2777_v49  ;;  %v203_v49 = vld [vmem:[%s3848_s30 + $0x208] sm:$0xff] }
  0x9f   : > { %v2781_v55 = vpop.eup %2780  ;;  %2800 = vrcp.f32 %v1210_v50  ;;  %v1212_v56 = vadd.f32 1.0, %v2779_v52  ;;  %v204_v52 = vld [vmem:[%s3848_s30 + $0x210] sm:$0xff]  ;;  %v2349_v58 = vmul.f32 -1.442695, %v203_v49 }
  0xa0   : > { %v2783_v59 = vpop.eup %2782  ;;  %2802 = vrcp.f32 %v1211_v53  ;;  %v1213_v60 = vadd.f32 1.0, %v2781_v55  ;;  %v205_v55 = vld [vmem:[%s3848_s30 + $0x218] sm:$0xff]  ;;  %v2350_v62 = vmul.f32 -1.442695, %v204_v52 }
  0xa1   : > { %v2785_v63 = vpop.eup %2784  ;;  %1969 = vst [vmem:[%s3874_s17 + $0x138] sm:$0xff] %v2783_v59  ;;  %2804 = vrcp.f32 %v1212_v56  ;;  %v206_v59 = vld [vmem:[%s3848_s30 + $0x220] sm:$0xff]  ;;  %v2351_v1 = vmul.f32 -1.442695, %v205_v55 }
  0xa2   : > { %v2787_v2 = vpop.eup %2786  ;;  %1970 = vst [vmem:[%s3874_s17 + $0x140] sm:$0xff] %v2785_v63  ;;  %2806 = vrcp.f32 %v1213_v60  ;;  %v207_v63 = vld [vmem:[%s3848_s30 + $0x228] sm:$0xff]  ;;  %v2352_v4 = vmul.f32 -1.442695, %v206_v59 }
  0xa3   : > { %v2789_v5 = vpop.eup %2788  ;;  %1971 = vst [vmem:[%s3874_s17 + $0x148] sm:$0xff] %v2787_v2  ;;  %2808 = vpow2.f32 %v2336_v57  ;;  %v208_v2 = vld [vmem:[%s3848_s30 + $0x230] sm:$0xff]  ;;  %v2353_v7 = vmul.f32 -1.442695, %v207_v63 }
  0xa4   : > { %v2791_v8 = vpop.eup %2790  ;;  %1972 = vst [vmem:[%s3874_s17 + $0x150] sm:$0xff] %v2789_v5  ;;  %2810 = vpow2.f32 %v2337_v61  ;;  %v209_v5 = vld [vmem:[%s3848_s30 + $0x238] sm:$0xff]  ;;  %v2354_v10 = vmul.f32 -1.442695, %v208_v2 }
  0xa5   : > { %v2793_v11 = vpop.eup %2792  ;;  %1973 = vst [vmem:[%s3874_s17 + $0x158] sm:$0xff] %v2791_v8  ;;  %2812 = vpow2.f32 %v2338_v0  ;;  %v210_v8 = vld [vmem:[%s3848_s30 + $0x240] sm:$0xff]  ;;  %v2355_v13 = vmul.f32 -1.442695, %v209_v5 }
  0xa6   : > { %v2795_v14 = vpop.eup %2794  ;;  %1974 = vst [vmem:[%s3874_s17 + $0x160] sm:$0xff] %v2793_v11  ;;  %2814 = vpow2.f32 %v2339_v3  ;;  %v211_v11 = vld [vmem:[%s3848_s30 + $0x248] sm:$0xff]  ;;  %v2356_v16 = vmul.f32 -1.442695, %v210_v8 }
  0xa7   : > { %v2797_v17 = vpop.eup %2796  ;;  %1975 = vst [vmem:[%s3874_s17 + $0x168] sm:$0xff] %v2795_v14  ;;  %2816 = vpow2.f32 %v2340_v6  ;;  %v212_v14 = vld [vmem:[%s3848_s30 + $0x250] sm:$0xff]  ;;  %v2357_v19 = vmul.f32 -1.442695, %v211_v11 }
  0xa8   : > { %v2799_v20 = vpop.eup %2798  ;;  %1976 = vst [vmem:[%s3874_s17 + $0x170] sm:$0xff] %v2797_v17  ;;  %2818 = vpow2.f32 %v2341_v9  ;;  %v213_v17 = vld [vmem:[%s3848_s30 + $0x258] sm:$0xff]  ;;  %v2358_v22 = vmul.f32 -1.442695, %v212_v14 }
  0xa9   : > { %v2801_v23 = vpop.eup %2800  ;;  %1977 = vst [vmem:[%s3874_s17 + $0x178] sm:$0xff] %v2799_v20  ;;  %2820 = vpow2.f32 %v2342_v12  ;;  %v214_v20 = vld [vmem:[%s3848_s30 + $0x260] sm:$0xff] }
  0xaa   : > { %v2803_v25 = vpop.eup %2802  ;;  %1978 = vst [vmem:[%s3874_s17 + $0x180] sm:$0xff] %v2801_v23  ;;  %2822 = vpow2.f32 %v2343_v15  ;;  %v215_v23 = vld [vmem:[%s3848_s30 + $0x268] sm:$0xff] }
  0xab   : > { %v2805_v27 = vpop.eup %2804  ;;  %1979 = vst [vmem:[%s3874_s17 + $0x188] sm:$0xff] %v2803_v25  ;;  %2824 = vpow2.f32 %v2344_v18  ;;  %v2359_v25 = vmul.f32 -1.442695, %v213_v17 }
  0xac   : > { %v2807_v29 = vpop.eup %2806  ;;  %1980 = vst [vmem:[%s3874_s17 + $0x190] sm:$0xff] %v2805_v27  ;;  %2826 = vpow2.f32 %v2345_v21  ;;  %v2360_v27 = vmul.f32 -1.442695, %v214_v20 }
  0xad   : > { %v2809_v30 = vpop.eup %2808  ;;  %1981 = vst [vmem:[%s3874_s17 + $0x198] sm:$0xff] %v2807_v29  ;;  %2828 = vpow2.f32 %v2346_v24  ;;  %v2361_v29 = vmul.f32 -1.442695, %v215_v23 }
  0xae   : > { %v2811_v31 = vpop.eup %2810  ;;  %v1214_v32 = vadd.f32 1.0, %v2809_v30  ;;  %2830 = vpow2.f32 %v2347_v26 }
  0xaf   : > { %v2813_v33 = vpop.eup %2812  ;;  %v1215_v34 = vadd.f32 1.0, %v2811_v31  ;;  %2832 = vpow2.f32 %v2348_v28 }
  0xb0   : > { %v2815_v35 = vpop.eup %2814  ;;  %2834 = vrcp.f32 %v1214_v32  ;;  %v1216_v36 = vadd.f32 1.0, %v2813_v33 }
  0xb1   : > { %v2817_v37 = vpop.eup %2816  ;;  %2836 = vrcp.f32 %v1215_v34  ;;  %v1217_v38 = vadd.f32 1.0, %v2815_v35 }
  0xb2   : > { %v2819_v39 = vpop.eup %2818  ;;  %2838 = vrcp.f32 %v1216_v36  ;;  %v1218_v40 = vadd.f32 1.0, %v2817_v37 }
  0xb3   : > { %v2821_v41 = vpop.eup %2820  ;;  %2840 = vrcp.f32 %v1217_v38  ;;  %v1219_v42 = vadd.f32 1.0, %v2819_v39 }
  0xb4   : > { %v2823_v43 = vpop.eup %2822  ;;  %2842 = vrcp.f32 %v1218_v40  ;;  %v1220_v44 = vadd.f32 1.0, %v2821_v41 }
  0xb5   : > { %v2825_v45 = vpop.eup %2824  ;;  %2844 = vrcp.f32 %v1219_v42  ;;  %v1221_v46 = vadd.f32 1.0, %v2823_v43 }
  0xb6   : > { %v2827_v47 = vpop.eup %2826  ;;  %2846 = vrcp.f32 %v1220_v44  ;;  %v1222_v48 = vadd.f32 1.0, %v2825_v45 }
  0xb7   : > { %v2829_v50 = vpop.eup %2828  ;;  %2848 = vrcp.f32 %v1221_v46  ;;  %v1223_v51 = vadd.f32 1.0, %v2827_v47 }
  0xb8   : > { %v2831_v53 = vpop.eup %2830  ;;  %2850 = vrcp.f32 %v1222_v48  ;;  %v1224_v54 = vadd.f32 1.0, %v2829_v50  ;;  %v216_v50 = vld [vmem:[%s3848_s30 + $0x270] sm:$0xff] }
  0xb9   : > { %v2833_v56 = vpop.eup %2832  ;;  %2852 = vrcp.f32 %v1223_v51  ;;  %v1225_v57 = vadd.f32 1.0, %v2831_v53  ;;  %v217_v53 = vld [vmem:[%s3848_s30 + $0x278] sm:$0xff]  ;;  %v2362_v59 = vmul.f32 -1.442695, %v216_v50 }
  0xba   : > { %v2835_v60 = vpop.eup %2834  ;;  %2854 = vrcp.f32 %v1224_v54  ;;  %v1226_v61 = vadd.f32 1.0, %v2833_v56  ;;  %v218_v56 = vld [vmem:[%s3848_s30 + $0x280] sm:$0xff]  ;;  %v2363_v63 = vmul.f32 -1.442695, %v217_v53 }
  0xbb   : > { %v2837_v0 = vpop.eup %2836  ;;  %1982 = vst [vmem:[%s3874_s17 + $0x1a0] sm:$0xff] %v2835_v60  ;;  %2856 = vrcp.f32 %v1225_v57  ;;  %v219_v60 = vld [vmem:[%s3848_s30 + $0x288] sm:$0xff]  ;;  %v2364_v2 = vmul.f32 -1.442695, %v218_v56 }
  0xbc   : > { %v2839_v3 = vpop.eup %2838  ;;  %1983 = vst [vmem:[%s3874_s17 + $0x1a8] sm:$0xff] %v2837_v0  ;;  %2858 = vrcp.f32 %v1226_v61  ;;  %v220_v0 = vld [vmem:[%s3848_s30 + $0x290] sm:$0xff]  ;;  %v2365_v5 = vmul.f32 -1.442695, %v219_v60 }
  0xbd   : > { %v2841_v6 = vpop.eup %2840  ;;  %1984 = vst [vmem:[%s3874_s17 + $0x1b0] sm:$0xff] %v2839_v3  ;;  %2860 = vpow2.f32 %v2349_v58  ;;  %v221_v3 = vld [vmem:[%s3848_s30 + $0x298] sm:$0xff]  ;;  %v2366_v8 = vmul.f32 -1.442695, %v220_v0 }
  0xbe   : > { %v2843_v9 = vpop.eup %2842  ;;  %1985 = vst [vmem:[%s3874_s17 + $0x1b8] sm:$0xff] %v2841_v6  ;;  %2862 = vpow2.f32 %v2350_v62  ;;  %v222_v6 = vld [vmem:[%s3848_s30 + $0x2a0] sm:$0xff]  ;;  %v2367_v11 = vmul.f32 -1.442695, %v221_v3 }
  0xbf   : > { %v2845_v12 = vpop.eup %2844  ;;  %1986 = vst [vmem:[%s3874_s17 + $0x1c0] sm:$0xff] %v2843_v9  ;;  %2864 = vpow2.f32 %v2351_v1  ;;  %v223_v9 = vld [vmem:[%s3848_s30 + $0x2a8] sm:$0xff]  ;;  %v2368_v14 = vmul.f32 -1.442695, %v222_v6 }
  0xc0   : > { %v2847_v15 = vpop.eup %2846  ;;  %1987 = vst [vmem:[%s3874_s17 + $0x1c8] sm:$0xff] %v2845_v12  ;;  %2866 = vpow2.f32 %v2352_v4  ;;  %v224_v12 = vld [vmem:[%s3848_s30 + $0x2b0] sm:$0xff]  ;;  %v2369_v17 = vmul.f32 -1.442695, %v223_v9 }
  0xc1   : > { %v2849_v18 = vpop.eup %2848  ;;  %1988 = vst [vmem:[%s3874_s17 + $0x1d0] sm:$0xff] %v2847_v15  ;;  %2868 = vpow2.f32 %v2353_v7  ;;  %v225_v15 = vld [vmem:[%s3848_s30 + $0x2b8] sm:$0xff]  ;;  %v2370_v20 = vmul.f32 -1.442695, %v224_v12 }
  0xc2   : > { %v2851_v21 = vpop.eup %2850  ;;  %1989 = vst [vmem:[%s3874_s17 + $0x1d8] sm:$0xff] %v2849_v18  ;;  %2870 = vpow2.f32 %v2354_v10  ;;  %v226_v18 = vld [vmem:[%s3848_s30 + $0x2c0] sm:$0xff]  ;;  %v2371_v23 = vmul.f32 -1.442695, %v225_v15 }
  0xc3   : > { %v2853_v24 = vpop.eup %2852  ;;  %1990 = vst [vmem:[%s3874_s17 + $0x1e0] sm:$0xff] %v2851_v21  ;;  %2872 = vpow2.f32 %v2355_v13  ;;  %v227_v21 = vld [vmem:[%s3848_s30 + $0x2c8] sm:$0xff] }
  0xc4   : > { %v2855_v26 = vpop.eup %2854  ;;  %1991 = vst [vmem:[%s3874_s17 + $0x1e8] sm:$0xff] %v2853_v24  ;;  %2874 = vpow2.f32 %v2356_v16  ;;  %v228_v24 = vld [vmem:[%s3848_s30 + $0x2d0] sm:$0xff] }
  0xc5   : > { %v2857_v28 = vpop.eup %2856  ;;  %1992 = vst [vmem:[%s3874_s17 + $0x1f0] sm:$0xff] %v2855_v26  ;;  %2876 = vpow2.f32 %v2357_v19  ;;  %v2372_v26 = vmul.f32 -1.442695, %v226_v18 }
  0xc6   : > { %v2859_v30 = vpop.eup %2858  ;;  %1993 = vst [vmem:[%s3874_s17 + $0x1f8] sm:$0xff] %v2857_v28  ;;  %2878 = vpow2.f32 %v2358_v22  ;;  %v2373_v28 = vmul.f32 -1.442695, %v227_v21 }
  0xc7   : > { %v2861_v31 = vpop.eup %2860  ;;  %1994 = vst [vmem:[%s3874_s17 + $0x200] sm:$0xff] %v2859_v30  ;;  %2880 = vpow2.f32 %v2359_v25  ;;  %v2374_v30 = vmul.f32 -1.442695, %v228_v24 }
  0xc8   : > { %v2863_v32 = vpop.eup %2862  ;;  %v1227_v33 = vadd.f32 1.0, %v2861_v31  ;;  %2882 = vpow2.f32 %v2360_v27 }
  0xc9   : > { %v2865_v34 = vpop.eup %2864  ;;  %v1228_v35 = vadd.f32 1.0, %v2863_v32  ;;  %2884 = vpow2.f32 %v2361_v29 }
  0xca   : > { %v2867_v36 = vpop.eup %2866  ;;  %2886 = vrcp.f32 %v1227_v33  ;;  %v1229_v37 = vadd.f32 1.0, %v2865_v34 }
  0xcb   : > { %v2869_v38 = vpop.eup %2868  ;;  %2888 = vrcp.f32 %v1228_v35  ;;  %v1230_v39 = vadd.f32 1.0, %v2867_v36 }
  0xcc   : > { %v2871_v40 = vpop.eup %2870  ;;  %2890 = vrcp.f32 %v1229_v37  ;;  %v1231_v41 = vadd.f32 1.0, %v2869_v38 }
  0xcd   : > { %v2873_v42 = vpop.eup %2872  ;;  %2892 = vrcp.f32 %v1230_v39  ;;  %v1232_v43 = vadd.f32 1.0, %v2871_v40 }
  0xce   : > { %v2875_v44 = vpop.eup %2874  ;;  %2894 = vrcp.f32 %v1231_v41  ;;  %v1233_v45 = vadd.f32 1.0, %v2873_v42 }
  0xcf   : > { %v2877_v46 = vpop.eup %2876  ;;  %2896 = vrcp.f32 %v1232_v43  ;;  %v1234_v47 = vadd.f32 1.0, %v2875_v44 }
  0xd0   : > { %v2879_v48 = vpop.eup %2878  ;;  %2898 = vrcp.f32 %v1233_v45  ;;  %v1235_v49 = vadd.f32 1.0, %v2877_v46 }
  0xd1   : > { %v2881_v51 = vpop.eup %2880  ;;  %2900 = vrcp.f32 %v1234_v47  ;;  %v1236_v52 = vadd.f32 1.0, %v2879_v48 }
  0xd2   : > { %v2883_v54 = vpop.eup %2882  ;;  %2902 = vrcp.f32 %v1235_v49  ;;  %v1237_v55 = vadd.f32 1.0, %v2881_v51  ;;  %v229_v51 = vld [vmem:[%s3848_s30 + $0x2d8] sm:$0xff] }
  0xd3   : > { %v2885_v57 = vpop.eup %2884  ;;  %2904 = vrcp.f32 %v1236_v52  ;;  %v1238_v58 = vadd.f32 1.0, %v2883_v54  ;;  %v230_v54 = vld [vmem:[%s3848_s30 + $0x2e0] sm:$0xff]  ;;  %v2375_v60 = vmul.f32 -1.442695, %v229_v51 }
  0xd4   : > { %v2887_v61 = vpop.eup %2886  ;;  %2906 = vrcp.f32 %v1237_v55  ;;  %v1239_v62 = vadd.f32 1.0, %v2885_v57  ;;  %v231_v57 = vld [vmem:[%s3848_s30 + $0x2e8] sm:$0xff]  ;;  %v2376_v0 = vmul.f32 -1.442695, %v230_v54 }
  0xd5   : > { %v2889_v1 = vpop.eup %2888  ;;  %1995 = vst [vmem:[%s3874_s17 + $0x208] sm:$0xff] %v2887_v61  ;;  %2908 = vrcp.f32 %v1238_v58  ;;  %v232_v61 = vld [vmem:[%s3848_s30 + $0x2f0] sm:$0xff]  ;;  %v2377_v3 = vmul.f32 -1.442695, %v231_v57 }
  0xd6   : > { %v2891_v4 = vpop.eup %2890  ;;  %1996 = vst [vmem:[%s3874_s17 + $0x210] sm:$0xff] %v2889_v1  ;;  %2910 = vrcp.f32 %v1239_v62  ;;  %v233_v1 = vld [vmem:[%s3848_s30 + $0x2f8] sm:$0xff]  ;;  %v2378_v6 = vmul.f32 -1.442695, %v232_v61 }
  0xd7   : > { %v2893_v7 = vpop.eup %2892  ;;  %1997 = vst [vmem:[%s3874_s17 + $0x218] sm:$0xff] %v2891_v4  ;;  %2912 = vpow2.f32 %v2362_v59  ;;  %v234_v4 = vld [vmem:[%s3848_s30 + $0x300] sm:$0xff]  ;;  %v2379_v9 = vmul.f32 -1.442695, %v233_v1 }
  0xd8   : > { %v2895_v10 = vpop.eup %2894  ;;  %1998 = vst [vmem:[%s3874_s17 + $0x220] sm:$0xff] %v2893_v7  ;;  %2914 = vpow2.f32 %v2363_v63  ;;  %v235_v7 = vld [vmem:[%s3848_s30 + $0x308] sm:$0xff]  ;;  %v2380_v12 = vmul.f32 -1.442695, %v234_v4 }
  0xd9   : > { %v2897_v13 = vpop.eup %2896  ;;  %1999 = vst [vmem:[%s3874_s17 + $0x228] sm:$0xff] %v2895_v10  ;;  %2916 = vpow2.f32 %v2364_v2  ;;  %v236_v10 = vld [vmem:[%s3848_s30 + $0x310] sm:$0xff]  ;;  %v2381_v15 = vmul.f32 -1.442695, %v235_v7 }
  0xda   : > { %v2899_v16 = vpop.eup %2898  ;;  %2000 = vst [vmem:[%s3874_s17 + $0x230] sm:$0xff] %v2897_v13  ;;  %2918 = vpow2.f32 %v2365_v5  ;;  %v237_v13 = vld [vmem:[%s3848_s30 + $0x318] sm:$0xff]  ;;  %v2382_v18 = vmul.f32 -1.442695, %v236_v10 }
  0xdb   : > { %v2901_v19 = vpop.eup %2900  ;;  %2001 = vst [vmem:[%s3874_s17 + $0x238] sm:$0xff] %v2899_v16  ;;  %2920 = vpow2.f32 %v2366_v8  ;;  %v238_v16 = vld [vmem:[%s3848_s30 + $0x320] sm:$0xff]  ;;  %v2383_v21 = vmul.f32 -1.442695, %v237_v13 }
  0xdc   : > { %v2903_v22 = vpop.eup %2902  ;;  %2002 = vst [vmem:[%s3874_s17 + $0x240] sm:$0xff] %v2901_v19  ;;  %2922 = vpow2.f32 %v2367_v11  ;;  %v239_v19 = vld [vmem:[%s3848_s30 + $0x328] sm:$0xff]  ;;  %v2384_v24 = vmul.f32 -1.442695, %v238_v16 }
  0xdd   : > { %v2905_v25 = vpop.eup %2904  ;;  %2003 = vst [vmem:[%s3874_s17 + $0x248] sm:$0xff] %v2903_v22  ;;  %2924 = vpow2.f32 %v2368_v14  ;;  %v240_v22 = vld [vmem:[%s3848_s30 + $0x330] sm:$0xff] }
  0xde   : > { %v2907_v27 = vpop.eup %2906  ;;  %2004 = vst [vmem:[%s3874_s17 + $0x250] sm:$0xff] %v2905_v25  ;;  %2926 = vpow2.f32 %v2369_v17  ;;  %v241_v25 = vld [vmem:[%s3848_s30 + $0x338] sm:$0xff] }
  0xdf   : > { %v2909_v29 = vpop.eup %2908  ;;  %2005 = vst [vmem:[%s3874_s17 + $0x258] sm:$0xff] %v2907_v27  ;;  %2928 = vpow2.f32 %v2370_v20  ;;  %v2385_v27 = vmul.f32 -1.442695, %v239_v19 }
  0xe0   : > { %v2911_v31 = vpop.eup %2910  ;;  %2006 = vst [vmem:[%s3874_s17 + $0x260] sm:$0xff] %v2909_v29  ;;  %2930 = vpow2.f32 %v2371_v23  ;;  %v2386_v29 = vmul.f32 -1.442695, %v240_v22 }
  0xe1   : > { %v2913_v32 = vpop.eup %2912  ;;  %2007 = vst [vmem:[%s3874_s17 + $0x268] sm:$0xff] %v2911_v31  ;;  %2932 = vpow2.f32 %v2372_v26  ;;  %v2387_v31 = vmul.f32 -1.442695, %v241_v25 }
  0xe2   : > { %v2915_v33 = vpop.eup %2914  ;;  %v1240_v34 = vadd.f32 1.0, %v2913_v32  ;;  %2934 = vpow2.f32 %v2373_v28 }
  0xe3   : > { %v2917_v35 = vpop.eup %2916  ;;  %v1241_v36 = vadd.f32 1.0, %v2915_v33  ;;  %2936 = vpow2.f32 %v2374_v30 }
  0xe4   : > { %v2919_v37 = vpop.eup %2918  ;;  %2938 = vrcp.f32 %v1240_v34  ;;  %v1242_v38 = vadd.f32 1.0, %v2917_v35 }
  0xe5   : > { %v2921_v39 = vpop.eup %2920  ;;  %2940 = vrcp.f32 %v1241_v36  ;;  %v1243_v40 = vadd.f32 1.0, %v2919_v37 }
  0xe6   : > { %v2923_v41 = vpop.eup %2922  ;;  %2942 = vrcp.f32 %v1242_v38  ;;  %v1244_v42 = vadd.f32 1.0, %v2921_v39 }
  0xe7   : > { %v2925_v43 = vpop.eup %2924  ;;  %2944 = vrcp.f32 %v1243_v40  ;;  %v1245_v44 = vadd.f32 1.0, %v2923_v41 }
  0xe8   : > { %v2927_v45 = vpop.eup %2926  ;;  %2946 = vrcp.f32 %v1244_v42  ;;  %v1246_v46 = vadd.f32 1.0, %v2925_v43 }
  0xe9   : > { %v2929_v47 = vpop.eup %2928  ;;  %2948 = vrcp.f32 %v1245_v44  ;;  %v1247_v48 = vadd.f32 1.0, %v2927_v45 }
  0xea   : > { %v2931_v49 = vpop.eup %2930  ;;  %2950 = vrcp.f32 %v1246_v46  ;;  %v1248_v50 = vadd.f32 1.0, %v2929_v47 }
  0xeb   : > { %v2933_v52 = vpop.eup %2932  ;;  %2952 = vrcp.f32 %v1247_v48  ;;  %v1249_v53 = vadd.f32 1.0, %v2931_v49 }
  0xec   : > { %v2935_v55 = vpop.eup %2934  ;;  %2954 = vrcp.f32 %v1248_v50  ;;  %v1250_v56 = vadd.f32 1.0, %v2933_v52  ;;  %v242_v52 = vld [vmem:[%s3848_s30 + $0x340] sm:$0xff] }
  0xed   : > { %v2937_v58 = vpop.eup %2936  ;;  %2956 = vrcp.f32 %v1249_v53  ;;  %v1251_v59 = vadd.f32 1.0, %v2935_v55  ;;  %v243_v55 = vld [vmem:[%s3848_s30 + $0x348] sm:$0xff]  ;;  %v2388_v61 = vmul.f32 -1.442695, %v242_v52 }
  0xee   : > { %v2939_v62 = vpop.eup %2938  ;;  %2958 = vrcp.f32 %v1250_v56  ;;  %v1252_v63 = vadd.f32 1.0, %v2937_v58  ;;  %v244_v58 = vld [vmem:[%s3848_s30 + $0x350] sm:$0xff]  ;;  %v2389_v1 = vmul.f32 -1.442695, %v243_v55 }
  0xef   : > { %v2941_v2 = vpop.eup %2940  ;;  %2008 = vst [vmem:[%s3874_s17 + $0x270] sm:$0xff] %v2939_v62  ;;  %2960 = vrcp.f32 %v1251_v59  ;;  %v245_v62 = vld [vmem:[%s3848_s30 + $0x358] sm:$0xff]  ;;  %v2390_v4 = vmul.f32 -1.442695, %v244_v58 }
  0xf0   : > { %v2943_v5 = vpop.eup %2942  ;;  %2009 = vst [vmem:[%s3874_s17 + $0x278] sm:$0xff] %v2941_v2  ;;  %2962 = vrcp.f32 %v1252_v63  ;;  %v246_v2 = vld [vmem:[%s3848_s30 + $0x360] sm:$0xff]  ;;  %v2391_v7 = vmul.f32 -1.442695, %v245_v62 }
  0xf1   : > { %v2945_v8 = vpop.eup %2944  ;;  %2010 = vst [vmem:[%s3874_s17 + $0x280] sm:$0xff] %v2943_v5  ;;  %2964 = vpow2.f32 %v2375_v60  ;;  %v247_v5 = vld [vmem:[%s3848_s30 + $0x368] sm:$0xff]  ;;  %v2392_v10 = vmul.f32 -1.442695, %v246_v2 }
  0xf2   : > { %v2947_v11 = vpop.eup %2946  ;;  %2011 = vst [vmem:[%s3874_s17 + $0x288] sm:$0xff] %v2945_v8  ;;  %2966 = vpow2.f32 %v2376_v0  ;;  %v248_v8 = vld [vmem:[%s3848_s30 + $0x370] sm:$0xff]  ;;  %v2393_v13 = vmul.f32 -1.442695, %v247_v5 }
  0xf3   : > { %v2949_v14 = vpop.eup %2948  ;;  %2012 = vst [vmem:[%s3874_s17 + $0x290] sm:$0xff] %v2947_v11  ;;  %2968 = vpow2.f32 %v2377_v3  ;;  %v249_v11 = vld [vmem:[%s3848_s30 + $0x378] sm:$0xff]  ;;  %v2394_v16 = vmul.f32 -1.442695, %v248_v8 }
  0xf4   : > { %v2951_v17 = vpop.eup %2950  ;;  %2013 = vst [vmem:[%s3874_s17 + $0x298] sm:$0xff] %v2949_v14  ;;  %2970 = vpow2.f32 %v2378_v6  ;;  %v250_v14 = vld [vmem:[%s3848_s30 + $0x380] sm:$0xff]  ;;  %v2395_v19 = vmul.f32 -1.442695, %v249_v11 }
  0xf5   : > { %v2953_v20 = vpop.eup %2952  ;;  %2014 = vst [vmem:[%s3874_s17 + $0x2a0] sm:$0xff] %v2951_v17  ;;  %2972 = vpow2.f32 %v2379_v9  ;;  %v251_v17 = vld [vmem:[%s3848_s30 + $0x388] sm:$0xff]  ;;  %v2396_v22 = vmul.f32 -1.442695, %v250_v14 }
  0xf6   : > { %v2955_v23 = vpop.eup %2954  ;;  %2015 = vst [vmem:[%s3874_s17 + $0x2a8] sm:$0xff] %v2953_v20  ;;  %2974 = vpow2.f32 %v2380_v12  ;;  %v252_v20 = vld [vmem:[%s3848_s30 + $0x390] sm:$0xff]  ;;  %v2397_v25 = vmul.f32 -1.442695, %v251_v17 }
  0xf7   : > { %v2957_v26 = vpop.eup %2956  ;;  %2016 = vst [vmem:[%s3874_s17 + $0x2b0] sm:$0xff] %v2955_v23  ;;  %2976 = vpow2.f32 %v2381_v15  ;;  %v253_v23 = vld [vmem:[%s3848_s30 + $0x398] sm:$0xff] }
  0xf8   : > { %v2959_v28 = vpop.eup %2958  ;;  %2017 = vst [vmem:[%s3874_s17 + $0x2b8] sm:$0xff] %v2957_v26  ;;  %2978 = vpow2.f32 %v2382_v18  ;;  %v254_v26 = vld [vmem:[%s3848_s30 + $0x3a0] sm:$0xff] }
  0xf9   : > { %v2961_v30 = vpop.eup %2960  ;;  %2018 = vst [vmem:[%s3874_s17 + $0x2c0] sm:$0xff] %v2959_v28  ;;  %2980 = vpow2.f32 %v2383_v21  ;;  %v2398_v28 = vmul.f32 -1.442695, %v252_v20 }
  0xfa   : > { %v2963_v32 = vpop.eup %2962  ;;  %2019 = vst [vmem:[%s3874_s17 + $0x2c8] sm:$0xff] %v2961_v30  ;;  %2982 = vpow2.f32 %v2384_v24  ;;  %v2399_v30 = vmul.f32 -1.442695, %v253_v23 }
  0xfb   : > { %v2965_v33 = vpop.eup %2964  ;;  %2020 = vst [vmem:[%s3874_s17 + $0x2d0] sm:$0xff] %v2963_v32  ;;  %2984 = vpow2.f32 %v2385_v27  ;;  %v2400_v32 = vmul.f32 -1.442695, %v254_v26 }
  0xfc   : > { %v2967_v34 = vpop.eup %2966  ;;  %v1253_v35 = vadd.f32 1.0, %v2965_v33  ;;  %2986 = vpow2.f32 %v2386_v29 }
  0xfd   : > { %v2969_v36 = vpop.eup %2968  ;;  %v1254_v37 = vadd.f32 1.0, %v2967_v34  ;;  %2988 = vpow2.f32 %v2387_v31 }
  0xfe   : > { %v2971_v38 = vpop.eup %2970  ;;  %2990 = vrcp.f32 %v1253_v35  ;;  %v1255_v39 = vadd.f32 1.0, %v2969_v36 }
  0xff   : > { %v2973_v40 = vpop.eup %2972  ;;  %2992 = vrcp.f32 %v1254_v37  ;;  %v1256_v41 = vadd.f32 1.0, %v2971_v38 }
 0x100   : > { %v2975_v42 = vpop.eup %2974  ;;  %2994 = vrcp.f32 %v1255_v39  ;;  %v1257_v43 = vadd.f32 1.0, %v2973_v40 }
 0x101   : > { %v2977_v44 = vpop.eup %2976  ;;  %2996 = vrcp.f32 %v1256_v41  ;;  %v1258_v45 = vadd.f32 1.0, %v2975_v42 }
 0x102   : > { %v2979_v46 = vpop.eup %2978  ;;  %2998 = vrcp.f32 %v1257_v43  ;;  %v1259_v47 = vadd.f32 1.0, %v2977_v44 }
 0x103   : > { %v2981_v48 = vpop.eup %2980  ;;  %3000 = vrcp.f32 %v1258_v45  ;;  %v1260_v49 = vadd.f32 1.0, %v2979_v46 }
 0x104   : > { %v2983_v50 = vpop.eup %2982  ;;  %3002 = vrcp.f32 %v1259_v47  ;;  %v1261_v51 = vadd.f32 1.0, %v2981_v48 }
 0x105   : > { %v2985_v53 = vpop.eup %2984  ;;  %3004 = vrcp.f32 %v1260_v49  ;;  %v1262_v54 = vadd.f32 1.0, %v2983_v50 }
 0x106   : > { %v2987_v56 = vpop.eup %2986  ;;  %3006 = vrcp.f32 %v1261_v51  ;;  %v1263_v57 = vadd.f32 1.0, %v2985_v53  ;;  %v255_v53 = vld [vmem:[%s3848_s30 + $0x3a8] sm:$0xff] }
 0x107   : > { %v2989_v59 = vpop.eup %2988  ;;  %3008 = vrcp.f32 %v1262_v54  ;;  %v1264_v60 = vadd.f32 1.0, %v2987_v56  ;;  %v256_v56 = vld [vmem:[%s3848_s30 + $0x3b0] sm:$0xff]  ;;  %v2401_v62 = vmul.f32 -1.442695, %v255_v53 }
 0x108   : > { %v2991_v63 = vpop.eup %2990  ;;  %3010 = vrcp.f32 %v1263_v57  ;;  %v1265_v0 = vadd.f32 1.0, %v2989_v59  ;;  %v257_v59 = vld [vmem:[%s3848_s30 + $0x3b8] sm:$0xff]  ;;  %v2402_v2 = vmul.f32 -1.442695, %v256_v56 }
 0x109   : > { %v2993_v3 = vpop.eup %2992  ;;  %2021 = vst [vmem:[%s3874_s17 + $0x2d8] sm:$0xff] %v2991_v63  ;;  %3012 = vrcp.f32 %v1264_v60  ;;  %v258_v63 = vld [vmem:[%s3848_s30 + $0x3c0] sm:$0xff]  ;;  %v2403_v5 = vmul.f32 -1.442695, %v257_v59 }
 0x10a   : > { %v2995_v6 = vpop.eup %2994  ;;  %2022 = vst [vmem:[%s3874_s17 + $0x2e0] sm:$0xff] %v2993_v3  ;;  %3014 = vrcp.f32 %v1265_v0  ;;  %v259_v3 = vld [vmem:[%s3848_s30 + $0x3c8] sm:$0xff]  ;;  %v2404_v8 = vmul.f32 -1.442695, %v258_v63 }
 0x10b   : > { %v2997_v9 = vpop.eup %2996  ;;  %2023 = vst [vmem:[%s3874_s17 + $0x2e8] sm:$0xff] %v2995_v6  ;;  %3016 = vpow2.f32 %v2388_v61  ;;  %v260_v6 = vld [vmem:[%s3848_s30 + $0x3d0] sm:$0xff]  ;;  %v2405_v11 = vmul.f32 -1.442695, %v259_v3 }
 0x10c   : > { %v2999_v12 = vpop.eup %2998  ;;  %2024 = vst [vmem:[%s3874_s17 + $0x2f0] sm:$0xff] %v2997_v9  ;;  %3018 = vpow2.f32 %v2389_v1  ;;  %v261_v9 = vld [vmem:[%s3848_s30 + $0x3d8] sm:$0xff]  ;;  %v2406_v14 = vmul.f32 -1.442695, %v260_v6 }
 0x10d   : > { %v3001_v15 = vpop.eup %3000  ;;  %2025 = vst [vmem:[%s3874_s17 + $0x2f8] sm:$0xff] %v2999_v12  ;;  %3020 = vpow2.f32 %v2390_v4  ;;  %v262_v12 = vld [vmem:[%s3848_s30 + $0x3e0] sm:$0xff]  ;;  %v2407_v17 = vmul.f32 -1.442695, %v261_v9 }
 0x10e   : > { %v3003_v18 = vpop.eup %3002  ;;  %2026 = vst [vmem:[%s3874_s17 + $0x300] sm:$0xff] %v3001_v15  ;;  %3022 = vpow2.f32 %v2391_v7  ;;  %v263_v15 = vld [vmem:[%s3848_s30 + $0x3e8] sm:$0xff]  ;;  %v2408_v20 = vmul.f32 -1.442695, %v262_v12 }
 0x10f   : > { %v3005_v21 = vpop.eup %3004  ;;  %2027 = vst [vmem:[%s3874_s17 + $0x308] sm:$0xff] %v3003_v18  ;;  %3024 = vpow2.f32 %v2392_v10  ;;  %v264_v18 = vld [vmem:[%s3848_s30 + $0x3f0] sm:$0xff]  ;;  %v2409_v23 = vmul.f32 -1.442695, %v263_v15 }
 0x110   : > { %v3007_v24 = vpop.eup %3006  ;;  %2028 = vst [vmem:[%s3874_s17 + $0x310] sm:$0xff] %v3005_v21  ;;  %3026 = vpow2.f32 %v2393_v13  ;;  %v265_v21 = vld [vmem:[%s3848_s30 + $0x3f8] sm:$0xff]  ;;  %v2410_v26 = vmul.f32 -1.442695, %v264_v18 }
 0x111   : > { %v3009_v27 = vpop.eup %3008  ;;  %2029 = vst [vmem:[%s3874_s17 + $0x318] sm:$0xff] %v3007_v24  ;;  %3028 = vpow2.f32 %v2394_v16  ;;  %v266_v24 = vld [vmem:[%s3848_s30 + $0x400] sm:$0xff] }
 0x112   : > { %v3011_v29 = vpop.eup %3010  ;;  %2030 = vst [vmem:[%s3874_s17 + $0x320] sm:$0xff] %v3009_v27  ;;  %3030 = vpow2.f32 %v2395_v19  ;;  %v267_v27 = vld [vmem:[%s3848_s30 + $0x408] sm:$0xff] }
 0x113   : > { %v3013_v31 = vpop.eup %3012  ;;  %2031 = vst [vmem:[%s3874_s17 + $0x328] sm:$0xff] %v3011_v29  ;;  %3032 = vpow2.f32 %v2396_v22  ;;  %v2411_v29 = vmul.f32 -1.442695, %v265_v21 }
 0x114   : > { %v3015_v33 = vpop.eup %3014  ;;  %2032 = vst [vmem:[%s3874_s17 + $0x330] sm:$0xff] %v3013_v31  ;;  %3034 = vpow2.f32 %v2397_v25  ;;  %v2412_v31 = vmul.f32 -1.442695, %v266_v24 }
 0x115   : > { %v3017_v34 = vpop.eup %3016  ;;  %2033 = vst [vmem:[%s3874_s17 + $0x338] sm:$0xff] %v3015_v33  ;;  %3036 = vpow2.f32 %v2398_v28  ;;  %v2413_v33 = vmul.f32 -1.442695, %v267_v27 }
 0x116   : > { %v3019_v35 = vpop.eup %3018  ;;  %v1266_v36 = vadd.f32 1.0, %v3017_v34  ;;  %3038 = vpow2.f32 %v2399_v30 }
 0x117   : > { %v3021_v37 = vpop.eup %3020  ;;  %v1267_v38 = vadd.f32 1.0, %v3019_v35  ;;  %3040 = vpow2.f32 %v2400_v32 }
 0x118   : > { %v3023_v39 = vpop.eup %3022  ;;  %3042 = vrcp.f32 %v1266_v36  ;;  %v1268_v40 = vadd.f32 1.0, %v3021_v37 }
 0x119   : > { %v3025_v41 = vpop.eup %3024  ;;  %3044 = vrcp.f32 %v1267_v38  ;;  %v1269_v42 = vadd.f32 1.0, %v3023_v39 }
 0x11a   : > { %v3027_v43 = vpop.eup %3026  ;;  %3046 = vrcp.f32 %v1268_v40  ;;  %v1270_v44 = vadd.f32 1.0, %v3025_v41 }
 0x11b   : > { %v3029_v45 = vpop.eup %3028  ;;  %3048 = vrcp.f32 %v1269_v42  ;;  %v1271_v46 = vadd.f32 1.0, %v3027_v43 }
 0x11c   : > { %v3031_v47 = vpop.eup %3030  ;;  %3050 = vrcp.f32 %v1270_v44  ;;  %v1272_v48 = vadd.f32 1.0, %v3029_v45 }
 0x11d   : > { %v3033_v49 = vpop.eup %3032  ;;  %3052 = vrcp.f32 %v1271_v46  ;;  %v1273_v50 = vadd.f32 1.0, %v3031_v47 }
 0x11e   : > { %v3035_v51 = vpop.eup %3034  ;;  %3054 = vrcp.f32 %v1272_v48  ;;  %v1274_v52 = vadd.f32 1.0, %v3033_v49 }
 0x11f   : > { %v3037_v54 = vpop.eup %3036  ;;  %3056 = vrcp.f32 %v1273_v50  ;;  %v1275_v55 = vadd.f32 1.0, %v3035_v51 }
 0x120   : > { %v3039_v57 = vpop.eup %3038  ;;  %3058 = vrcp.f32 %v1274_v52  ;;  %v1276_v58 = vadd.f32 1.0, %v3037_v54  ;;  %v268_v54 = vld [vmem:[%s3848_s30 + $0x410] sm:$0xff] }
 0x121   : > { %v3041_v60 = vpop.eup %3040  ;;  %3060 = vrcp.f32 %v1275_v55  ;;  %v1277_v61 = vadd.f32 1.0, %v3039_v57  ;;  %v269_v57 = vld [vmem:[%s3848_s30 + $0x418] sm:$0xff]  ;;  %v2414_v63 = vmul.f32 -1.442695, %v268_v54 }
 0x122   : > { %v3043_v0 = vpop.eup %3042  ;;  %3062 = vrcp.f32 %v1276_v58  ;;  %v1278_v1 = vadd.f32 1.0, %v3041_v60  ;;  %v270_v60 = vld [vmem:[%s3848_s30 + $0x420] sm:$0xff]  ;;  %v2415_v3 = vmul.f32 -1.442695, %v269_v57 }
 0x123   : > { %v3045_v4 = vpop.eup %3044  ;;  %2034 = vst [vmem:[%s3874_s17 + $0x340] sm:$0xff] %v3043_v0  ;;  %3064 = vrcp.f32 %v1277_v61  ;;  %v271_v0 = vld [vmem:[%s3848_s30 + $0x428] sm:$0xff]  ;;  %v2416_v6 = vmul.f32 -1.442695, %v270_v60 }
 0x124   : > { %v3047_v7 = vpop.eup %3046  ;;  %2035 = vst [vmem:[%s3874_s17 + $0x348] sm:$0xff] %v3045_v4  ;;  %3066 = vrcp.f32 %v1278_v1  ;;  %v272_v4 = vld [vmem:[%s3848_s30 + $0x430] sm:$0xff]  ;;  %v2417_v9 = vmul.f32 -1.442695, %v271_v0 }
 0x125   : > { %v3049_v10 = vpop.eup %3048  ;;  %2036 = vst [vmem:[%s3874_s17 + $0x350] sm:$0xff] %v3047_v7  ;;  %3068 = vpow2.f32 %v2401_v62  ;;  %v273_v7 = vld [vmem:[%s3848_s30 + $0x438] sm:$0xff]  ;;  %v2418_v12 = vmul.f32 -1.442695, %v272_v4 }
 0x126   : > { %v3051_v13 = vpop.eup %3050  ;;  %2037 = vst [vmem:[%s3874_s17 + $0x358] sm:$0xff] %v3049_v10  ;;  %3070 = vpow2.f32 %v2402_v2  ;;  %v274_v10 = vld [vmem:[%s3848_s30 + $0x440] sm:$0xff]  ;;  %v2419_v15 = vmul.f32 -1.442695, %v273_v7 }
 0x127   : > { %v3053_v16 = vpop.eup %3052  ;;  %2038 = vst [vmem:[%s3874_s17 + $0x360] sm:$0xff] %v3051_v13  ;;  %3072 = vpow2.f32 %v2403_v5  ;;  %v275_v13 = vld [vmem:[%s3848_s30 + $0x448] sm:$0xff]  ;;  %v2420_v18 = vmul.f32 -1.442695, %v274_v10 }
 0x128   : > { %v3055_v19 = vpop.eup %3054  ;;  %2039 = vst [vmem:[%s3874_s17 + $0x368] sm:$0xff] %v3053_v16  ;;  %3074 = vpow2.f32 %v2404_v8  ;;  %v276_v16 = vld [vmem:[%s3848_s30 + $0x450] sm:$0xff]  ;;  %v2421_v21 = vmul.f32 -1.442695, %v275_v13 }
 0x129   : > { %v3057_v22 = vpop.eup %3056  ;;  %2040 = vst [vmem:[%s3874_s17 + $0x370] sm:$0xff] %v3055_v19  ;;  %3076 = vpow2.f32 %v2405_v11  ;;  %v277_v19 = vld [vmem:[%s3848_s30 + $0x458] sm:$0xff]  ;;  %v2422_v24 = vmul.f32 -1.442695, %v276_v16 }
 0x12a   : > { %v3059_v25 = vpop.eup %3058  ;;  %2041 = vst [vmem:[%s3874_s17 + $0x378] sm:$0xff] %v3057_v22  ;;  %3078 = vpow2.f32 %v2406_v14  ;;  %v278_v22 = vld [vmem:[%s3848_s30 + $0x460] sm:$0xff]  ;;  %v2423_v27 = vmul.f32 -1.442695, %v277_v19 }
 0x12b   : > { %v3061_v28 = vpop.eup %3060  ;;  %2042 = vst [vmem:[%s3874_s17 + $0x380] sm:$0xff] %v3059_v25  ;;  %3080 = vpow2.f32 %v2407_v17  ;;  %v279_v25 = vld [vmem:[%s3848_s30 + $0x468] sm:$0xff] }
 0x12c   : > { %v3063_v30 = vpop.eup %3062  ;;  %2043 = vst [vmem:[%s3874_s17 + $0x388] sm:$0xff] %v3061_v28  ;;  %3082 = vpow2.f32 %v2408_v20  ;;  %v280_v28 = vld [vmem:[%s3848_s30 + $0x470] sm:$0xff] }
 0x12d   : > { %v3065_v32 = vpop.eup %3064  ;;  %2044 = vst [vmem:[%s3874_s17 + $0x390] sm:$0xff] %v3063_v30  ;;  %3084 = vpow2.f32 %v2409_v23  ;;  %v2424_v30 = vmul.f32 -1.442695, %v278_v22 }
 0x12e   : > { %v3067_v34 = vpop.eup %3066  ;;  %2045 = vst [vmem:[%s3874_s17 + $0x398] sm:$0xff] %v3065_v32  ;;  %3086 = vpow2.f32 %v2410_v26  ;;  %v2425_v32 = vmul.f32 -1.442695, %v279_v25 }
 0x12f   : > { %v3069_v35 = vpop.eup %3068  ;;  %2046 = vst [vmem:[%s3874_s17 + $0x3a0] sm:$0xff] %v3067_v34  ;;  %3088 = vpow2.f32 %v2411_v29  ;;  %v2426_v34 = vmul.f32 -1.442695, %v280_v28 }
 0x130   : > { %v3071_v36 = vpop.eup %3070  ;;  %v1279_v37 = vadd.f32 1.0, %v3069_v35  ;;  %3090 = vpow2.f32 %v2412_v31 }
 0x131   : > { %v3073_v38 = vpop.eup %3072  ;;  %v1280_v39 = vadd.f32 1.0, %v3071_v36  ;;  %3092 = vpow2.f32 %v2413_v33 }
 0x132   : > { %v3075_v40 = vpop.eup %3074  ;;  %3094 = vrcp.f32 %v1279_v37  ;;  %v1281_v41 = vadd.f32 1.0, %v3073_v38 }
 0x133   : > { %v3077_v42 = vpop.eup %3076  ;;  %3096 = vrcp.f32 %v1280_v39  ;;  %v1282_v43 = vadd.f32 1.0, %v3075_v40 }
 0x134   : > { %v3079_v44 = vpop.eup %3078  ;;  %3098 = vrcp.f32 %v1281_v41  ;;  %v1283_v45 = vadd.f32 1.0, %v3077_v42 }
 0x135   : > { %v3081_v46 = vpop.eup %3080  ;;  %3100 = vrcp.f32 %v1282_v43  ;;  %v1284_v47 = vadd.f32 1.0, %v3079_v44 }
 0x136   : > { %v3083_v48 = vpop.eup %3082  ;;  %3102 = vrcp.f32 %v1283_v45  ;;  %v1285_v49 = vadd.f32 1.0, %v3081_v46 }
 0x137   : > { %v3085_v50 = vpop.eup %3084  ;;  %3104 = vrcp.f32 %v1284_v47  ;;  %v1286_v51 = vadd.f32 1.0, %v3083_v48 }
 0x138   : > { %v3087_v52 = vpop.eup %3086  ;;  %3106 = vrcp.f32 %v1285_v49  ;;  %v1287_v53 = vadd.f32 1.0, %v3085_v50 }
 0x139   : > { %v3089_v55 = vpop.eup %3088  ;;  %3108 = vrcp.f32 %v1286_v51  ;;  %v1288_v56 = vadd.f32 1.0, %v3087_v52 }
 0x13a   : > { %v3091_v58 = vpop.eup %3090  ;;  %3110 = vrcp.f32 %v1287_v53  ;;  %v1289_v59 = vadd.f32 1.0, %v3089_v55  ;;  %v281_v55 = vld [vmem:[%s3848_s30 + $0x478] sm:$0xff] }
 0x13b   : > { %v3093_v61 = vpop.eup %3092  ;;  %3112 = vrcp.f32 %v1288_v56  ;;  %v1290_v62 = vadd.f32 1.0, %v3091_v58  ;;  %v282_v58 = vld [vmem:[%s3848_s30 + $0x480] sm:$0xff]  ;;  %v2427_v0 = vmul.f32 -1.442695, %v281_v55 }
 0x13c   : > { %v3095_v1 = vpop.eup %3094  ;;  %3114 = vrcp.f32 %v1289_v59  ;;  %v1291_v2 = vadd.f32 1.0, %v3093_v61  ;;  %v283_v61 = vld [vmem:[%s3848_s30 + $0x488] sm:$0xff]  ;;  %v2428_v4 = vmul.f32 -1.442695, %v282_v58 }
 0x13d   : > { %v3097_v5 = vpop.eup %3096  ;;  %2047 = vst [vmem:[%s3874_s17 + $0x3a8] sm:$0xff] %v3095_v1  ;;  %3116 = vrcp.f32 %v1290_v62  ;;  %v284_v1 = vld [vmem:[%s3848_s30 + $0x490] sm:$0xff]  ;;  %v2429_v7 = vmul.f32 -1.442695, %v283_v61 }
 0x13e   : > { %v3099_v8 = vpop.eup %3098  ;;  %2048 = vst [vmem:[%s3874_s17 + $0x3b0] sm:$0xff] %v3097_v5  ;;  %3118 = vrcp.f32 %v1291_v2  ;;  %v285_v5 = vld [vmem:[%s3848_s30 + $0x498] sm:$0xff]  ;;  %v2430_v10 = vmul.f32 -1.442695, %v284_v1 }
 0x13f   : > { %v3101_v11 = vpop.eup %3100  ;;  %2049 = vst [vmem:[%s3874_s17 + $0x3b8] sm:$0xff] %v3099_v8  ;;  %3120 = vpow2.f32 %v2414_v63  ;;  %v286_v8 = vld [vmem:[%s3848_s30 + $0x4a0] sm:$0xff]  ;;  %v2431_v13 = vmul.f32 -1.442695, %v285_v5 }
 0x140   : > { %v3103_v14 = vpop.eup %3102  ;;  %2050 = vst [vmem:[%s3874_s17 + $0x3c0] sm:$0xff] %v3101_v11  ;;  %3122 = vpow2.f32 %v2415_v3  ;;  %v287_v11 = vld [vmem:[%s3848_s30 + $0x4a8] sm:$0xff]  ;;  %v2432_v16 = vmul.f32 -1.442695, %v286_v8 }
 0x141   : > { %v3105_v17 = vpop.eup %3104  ;;  %2051 = vst [vmem:[%s3874_s17 + $0x3c8] sm:$0xff] %v3103_v14  ;;  %3124 = vpow2.f32 %v2416_v6  ;;  %v288_v14 = vld [vmem:[%s3848_s30 + $0x4b0] sm:$0xff]  ;;  %v2433_v19 = vmul.f32 -1.442695, %v287_v11 }
 0x142   : > { %v3107_v20 = vpop.eup %3106  ;;  %2052 = vst [vmem:[%s3874_s17 + $0x3d0] sm:$0xff] %v3105_v17  ;;  %3126 = vpow2.f32 %v2417_v9  ;;  %v289_v17 = vld [vmem:[%s3848_s30 + $0x4b8] sm:$0xff]  ;;  %v2434_v22 = vmul.f32 -1.442695, %v288_v14 }
 0x143   : > { %v3109_v23 = vpop.eup %3108  ;;  %2053 = vst [vmem:[%s3874_s17 + $0x3d8] sm:$0xff] %v3107_v20  ;;  %3128 = vpow2.f32 %v2418_v12  ;;  %v290_v20 = vld [vmem:[%s3848_s30 + $0x4c0] sm:$0xff]  ;;  %v2435_v25 = vmul.f32 -1.442695, %v289_v17 }
 0x144   : > { %v3111_v26 = vpop.eup %3110  ;;  %2054 = vst [vmem:[%s3874_s17 + $0x3e0] sm:$0xff] %v3109_v23  ;;  %3130 = vpow2.f32 %v2419_v15  ;;  %v291_v23 = vld [vmem:[%s3848_s30 + $0x4c8] sm:$0xff]  ;;  %v2436_v28 = vmul.f32 -1.442695, %v290_v20 }
 0x145   : > { %v3113_v29 = vpop.eup %3112  ;;  %2055 = vst [vmem:[%s3874_s17 + $0x3e8] sm:$0xff] %v3111_v26  ;;  %3132 = vpow2.f32 %v2420_v18  ;;  %v292_v26 = vld [vmem:[%s3848_s30 + $0x4d0] sm:$0xff] }
 0x146   : > { %v3115_v31 = vpop.eup %3114  ;;  %2056 = vst [vmem:[%s3874_s17 + $0x3f0] sm:$0xff] %v3113_v29  ;;  %3134 = vpow2.f32 %v2421_v21  ;;  %v293_v29 = vld [vmem:[%s3848_s30 + $0x4d8] sm:$0xff] }
 0x147   : > { %v3117_v33 = vpop.eup %3116  ;;  %2057 = vst [vmem:[%s3874_s17 + $0x3f8] sm:$0xff] %v3115_v31  ;;  %3136 = vpow2.f32 %v2422_v24  ;;  %v2437_v31 = vmul.f32 -1.442695, %v291_v23 }
 0x148   : > { %v3119_v35 = vpop.eup %3118  ;;  %2058 = vst [vmem:[%s3874_s17 + $0x400] sm:$0xff] %v3117_v33  ;;  %3138 = vpow2.f32 %v2423_v27  ;;  %v2438_v33 = vmul.f32 -1.442695, %v292_v26 }
 0x149   : > { %v3121_v36 = vpop.eup %3120  ;;  %2059 = vst [vmem:[%s3874_s17 + $0x408] sm:$0xff] %v3119_v35  ;;  %3140 = vpow2.f32 %v2424_v30  ;;  %v2439_v35 = vmul.f32 -1.442695, %v293_v29 }
 0x14a   : > { %v3123_v37 = vpop.eup %3122  ;;  %v1292_v38 = vadd.f32 1.0, %v3121_v36  ;;  %3142 = vpow2.f32 %v2425_v32 }
 0x14b   : > { %v3125_v39 = vpop.eup %3124  ;;  %v1293_v40 = vadd.f32 1.0, %v3123_v37  ;;  %3144 = vpow2.f32 %v2426_v34 }
 0x14c   : > { %v3127_v41 = vpop.eup %3126  ;;  %3146 = vrcp.f32 %v1292_v38  ;;  %v1294_v42 = vadd.f32 1.0, %v3125_v39 }
 0x14d   : > { %v3129_v43 = vpop.eup %3128  ;;  %3148 = vrcp.f32 %v1293_v40  ;;  %v1295_v44 = vadd.f32 1.0, %v3127_v41 }
 0x14e   : > { %v3131_v45 = vpop.eup %3130  ;;  %3150 = vrcp.f32 %v1294_v42  ;;  %v1296_v46 = vadd.f32 1.0, %v3129_v43 }
 0x14f   : > { %v3133_v47 = vpop.eup %3132  ;;  %3152 = vrcp.f32 %v1295_v44  ;;  %v1297_v48 = vadd.f32 1.0, %v3131_v45 }
 0x150   : > { %v3135_v49 = vpop.eup %3134  ;;  %3154 = vrcp.f32 %v1296_v46  ;;  %v1298_v50 = vadd.f32 1.0, %v3133_v47 }
 0x151   : > { %v3137_v51 = vpop.eup %3136  ;;  %3156 = vrcp.f32 %v1297_v48  ;;  %v1299_v52 = vadd.f32 1.0, %v3135_v49 }
 0x152   : > { %v3139_v53 = vpop.eup %3138  ;;  %3158 = vrcp.f32 %v1298_v50  ;;  %v1300_v54 = vadd.f32 1.0, %v3137_v51 }
 0x153   : > { %v3141_v56 = vpop.eup %3140  ;;  %3160 = vrcp.f32 %v1299_v52  ;;  %v1301_v57 = vadd.f32 1.0, %v3139_v53 }
 0x154   : > { %v3143_v59 = vpop.eup %3142  ;;  %3162 = vrcp.f32 %v1300_v54  ;;  %v1302_v60 = vadd.f32 1.0, %v3141_v56  ;;  %v294_v56 = vld [vmem:[%s3848_s30 + $0x4e0] sm:$0xff] }
 0x155   : > { %v3145_v62 = vpop.eup %3144  ;;  %3164 = vrcp.f32 %v1301_v57  ;;  %v1303_v63 = vadd.f32 1.0, %v3143_v59  ;;  %v295_v59 = vld [vmem:[%s3848_s30 + $0x4e8] sm:$0xff]  ;;  %v2440_v1 = vmul.f32 -1.442695, %v294_v56 }
 0x156   : > { %v3147_v2 = vpop.eup %3146  ;;  %3166 = vrcp.f32 %v1302_v60  ;;  %v1304_v3 = vadd.f32 1.0, %v3145_v62  ;;  %v296_v62 = vld [vmem:[%s3848_s30 + $0x4f0] sm:$0xff]  ;;  %v2441_v5 = vmul.f32 -1.442695, %v295_v59 }
 0x157   : > { %v3149_v6 = vpop.eup %3148  ;;  %2060 = vst [vmem:[%s3874_s17 + $0x410] sm:$0xff] %v3147_v2  ;;  %3168 = vrcp.f32 %v1303_v63  ;;  %v297_v2 = vld [vmem:[%s3848_s30 + $0x4f8] sm:$0xff]  ;;  %v2442_v8 = vmul.f32 -1.442695, %v296_v62 }
 0x158   : > { %v3151_v9 = vpop.eup %3150  ;;  %2061 = vst [vmem:[%s3874_s17 + $0x418] sm:$0xff] %v3149_v6  ;;  %3170 = vrcp.f32 %v1304_v3  ;;  %v298_v6 = vld [vmem:[%s3848_s30 + $0x500] sm:$0xff]  ;;  %v2443_v11 = vmul.f32 -1.442695, %v297_v2 }
 0x159   : > { %v3153_v12 = vpop.eup %3152  ;;  %2062 = vst [vmem:[%s3874_s17 + $0x420] sm:$0xff] %v3151_v9  ;;  %3172 = vpow2.f32 %v2427_v0  ;;  %v299_v9 = vld [vmem:[%s3848_s30 + $0x508] sm:$0xff]  ;;  %v2444_v14 = vmul.f32 -1.442695, %v298_v6 }
 0x15a   : > { %v3155_v15 = vpop.eup %3154  ;;  %2063 = vst [vmem:[%s3874_s17 + $0x428] sm:$0xff] %v3153_v12  ;;  %3174 = vpow2.f32 %v2428_v4  ;;  %v300_v12 = vld [vmem:[%s3848_s30 + $0x510] sm:$0xff]  ;;  %v2445_v17 = vmul.f32 -1.442695, %v299_v9 }
 0x15b   : > { %v3157_v18 = vpop.eup %3156  ;;  %2064 = vst [vmem:[%s3874_s17 + $0x430] sm:$0xff] %v3155_v15  ;;  %3176 = vpow2.f32 %v2429_v7  ;;  %v301_v15 = vld [vmem:[%s3848_s30 + $0x518] sm:$0xff]  ;;  %v2446_v20 = vmul.f32 -1.442695, %v300_v12 }
 0x15c   : > { %v3159_v21 = vpop.eup %3158  ;;  %2065 = vst [vmem:[%s3874_s17 + $0x438] sm:$0xff] %v3157_v18  ;;  %3178 = vpow2.f32 %v2430_v10  ;;  %v302_v18 = vld [vmem:[%s3848_s30 + $0x520] sm:$0xff]  ;;  %v2447_v23 = vmul.f32 -1.442695, %v301_v15 }
 0x15d   : > { %v3161_v24 = vpop.eup %3160  ;;  %2066 = vst [vmem:[%s3874_s17 + $0x440] sm:$0xff] %v3159_v21  ;;  %3180 = vpow2.f32 %v2431_v13  ;;  %v303_v21 = vld [vmem:[%s3848_s30 + $0x528] sm:$0xff]  ;;  %v2448_v26 = vmul.f32 -1.442695, %v302_v18 }
 0x15e   : > { %v3163_v27 = vpop.eup %3162  ;;  %2067 = vst [vmem:[%s3874_s17 + $0x448] sm:$0xff] %v3161_v24  ;;  %3182 = vpow2.f32 %v2432_v16  ;;  %v304_v24 = vld [vmem:[%s3848_s30 + $0x530] sm:$0xff]  ;;  %v2449_v29 = vmul.f32 -1.442695, %v303_v21 }
 0x15f   : > { %v3165_v30 = vpop.eup %3164  ;;  %2068 = vst [vmem:[%s3874_s17 + $0x450] sm:$0xff] %v3163_v27  ;;  %3184 = vpow2.f32 %v2433_v19  ;;  %v305_v27 = vld [vmem:[%s3848_s30 + $0x538] sm:$0xff] }
 0x160   : > { %v3167_v32 = vpop.eup %3166  ;;  %2069 = vst [vmem:[%s3874_s17 + $0x458] sm:$0xff] %v3165_v30  ;;  %3186 = vpow2.f32 %v2434_v22  ;;  %v306_v30 = vld [vmem:[%s3848_s30 + $0x540] sm:$0xff] }
 0x161   : > { %v3169_v34 = vpop.eup %3168  ;;  %2070 = vst [vmem:[%s3874_s17 + $0x460] sm:$0xff] %v3167_v32  ;;  %3188 = vpow2.f32 %v2435_v25  ;;  %v2450_v32 = vmul.f32 -1.442695, %v304_v24 }
 0x162   : > { %v3171_v36 = vpop.eup %3170  ;;  %2071 = vst [vmem:[%s3874_s17 + $0x468] sm:$0xff] %v3169_v34  ;;  %3190 = vpow2.f32 %v2436_v28  ;;  %v2451_v34 = vmul.f32 -1.442695, %v305_v27 }
 0x163   : > { %v3173_v37 = vpop.eup %3172  ;;  %2072 = vst [vmem:[%s3874_s17 + $0x470] sm:$0xff] %v3171_v36  ;;  %3192 = vpow2.f32 %v2437_v31  ;;  %v2452_v36 = vmul.f32 -1.442695, %v306_v30 }
 0x164   : > { %v3175_v38 = vpop.eup %3174  ;;  %v1305_v39 = vadd.f32 1.0, %v3173_v37  ;;  %3194 = vpow2.f32 %v2438_v33 }
 0x165   : > { %v3177_v40 = vpop.eup %3176  ;;  %v1306_v41 = vadd.f32 1.0, %v3175_v38  ;;  %3196 = vpow2.f32 %v2439_v35 }
 0x166   : > { %v3179_v42 = vpop.eup %3178  ;;  %3198 = vrcp.f32 %v1305_v39  ;;  %v1307_v43 = vadd.f32 1.0, %v3177_v40 }
 0x167   : > { %v3181_v44 = vpop.eup %3180  ;;  %3200 = vrcp.f32 %v1306_v41  ;;  %v1308_v45 = vadd.f32 1.0, %v3179_v42 }
 0x168   : > { %v3183_v46 = vpop.eup %3182  ;;  %3202 = vrcp.f32 %v1307_v43  ;;  %v1309_v47 = vadd.f32 1.0, %v3181_v44 }
 0x169   : > { %v3185_v48 = vpop.eup %3184  ;;  %3204 = vrcp.f32 %v1308_v45  ;;  %v1310_v49 = vadd.f32 1.0, %v3183_v46 }
 0x16a   : > { %v3187_v50 = vpop.eup %3186  ;;  %3206 = vrcp.f32 %v1309_v47  ;;  %v1311_v51 = vadd.f32 1.0, %v3185_v48 }
 0x16b   : > { %v3189_v52 = vpop.eup %3188  ;;  %3208 = vrcp.f32 %v1310_v49  ;;  %v1312_v53 = vadd.f32 1.0, %v3187_v50 }
 0x16c   : > { %v3191_v54 = vpop.eup %3190  ;;  %3210 = vrcp.f32 %v1311_v51  ;;  %v1313_v55 = vadd.f32 1.0, %v3189_v52 }
 0x16d   : > { %v3193_v57 = vpop.eup %3192  ;;  %3212 = vrcp.f32 %v1312_v53  ;;  %v1314_v58 = vadd.f32 1.0, %v3191_v54 }
 0x16e   : > { %v3195_v60 = vpop.eup %3194  ;;  %3214 = vrcp.f32 %v1313_v55  ;;  %v1315_v61 = vadd.f32 1.0, %v3193_v57  ;;  %v307_v57 = vld [vmem:[%s3848_s30 + $0x548] sm:$0xff] }
 0x16f   : > { %v3197_v63 = vpop.eup %3196  ;;  %3216 = vrcp.f32 %v1314_v58  ;;  %v1316_v0 = vadd.f32 1.0, %v3195_v60  ;;  %v308_v60 = vld [vmem:[%s3848_s30 + $0x550] sm:$0xff]  ;;  %v2453_v2 = vmul.f32 -1.442695, %v307_v57 }
 0x170   : > { %v3199_v3 = vpop.eup %3198  ;;  %3218 = vrcp.f32 %v1315_v61  ;;  %v1317_v4 = vadd.f32 1.0, %v3197_v63  ;;  %v309_v63 = vld [vmem:[%s3848_s30 + $0x558] sm:$0xff]  ;;  %v2454_v6 = vmul.f32 -1.442695, %v308_v60 }
 0x171   : > { %v3201_v7 = vpop.eup %3200  ;;  %2073 = vst [vmem:[%s3874_s17 + $0x478] sm:$0xff] %v3199_v3  ;;  %3220 = vrcp.f32 %v1316_v0  ;;  %v310_v3 = vld [vmem:[%s3848_s30 + $0x560] sm:$0xff]  ;;  %v2455_v9 = vmul.f32 -1.442695, %v309_v63 }
 0x172   : > { %v3203_v10 = vpop.eup %3202  ;;  %2074 = vst [vmem:[%s3874_s17 + $0x480] sm:$0xff] %v3201_v7  ;;  %3222 = vrcp.f32 %v1317_v4  ;;  %v311_v7 = vld [vmem:[%s3848_s30 + $0x568] sm:$0xff]  ;;  %v2456_v12 = vmul.f32 -1.442695, %v310_v3 }
 0x173   : > { %v3205_v13 = vpop.eup %3204  ;;  %2075 = vst [vmem:[%s3874_s17 + $0x488] sm:$0xff] %v3203_v10  ;;  %3224 = vpow2.f32 %v2440_v1  ;;  %v312_v10 = vld [vmem:[%s3848_s30 + $0x570] sm:$0xff]  ;;  %v2457_v15 = vmul.f32 -1.442695, %v311_v7 }
 0x174   : > { %v3207_v16 = vpop.eup %3206  ;;  %2076 = vst [vmem:[%s3874_s17 + $0x490] sm:$0xff] %v3205_v13  ;;  %3226 = vpow2.f32 %v2441_v5  ;;  %v313_v13 = vld [vmem:[%s3848_s30 + $0x578] sm:$0xff]  ;;  %v2458_v18 = vmul.f32 -1.442695, %v312_v10 }
 0x175   : > { %v3209_v19 = vpop.eup %3208  ;;  %2077 = vst [vmem:[%s3874_s17 + $0x498] sm:$0xff] %v3207_v16  ;;  %3228 = vpow2.f32 %v2442_v8  ;;  %v314_v16 = vld [vmem:[%s3848_s30 + $0x580] sm:$0xff]  ;;  %v2459_v21 = vmul.f32 -1.442695, %v313_v13 }
 0x176   : > { %v3211_v22 = vpop.eup %3210  ;;  %2078 = vst [vmem:[%s3874_s17 + $0x4a0] sm:$0xff] %v3209_v19  ;;  %3230 = vpow2.f32 %v2443_v11  ;;  %v315_v19 = vld [vmem:[%s3848_s30 + $0x588] sm:$0xff]  ;;  %v2460_v24 = vmul.f32 -1.442695, %v314_v16 }
 0x177   : > { %v3213_v25 = vpop.eup %3212  ;;  %2079 = vst [vmem:[%s3874_s17 + $0x4a8] sm:$0xff] %v3211_v22  ;;  %3232 = vpow2.f32 %v2444_v14  ;;  %v316_v22 = vld [vmem:[%s3848_s30 + $0x590] sm:$0xff]  ;;  %v2461_v27 = vmul.f32 -1.442695, %v315_v19 }
 0x178   : > { %v3215_v28 = vpop.eup %3214  ;;  %2080 = vst [vmem:[%s3874_s17 + $0x4b0] sm:$0xff] %v3213_v25  ;;  %3234 = vpow2.f32 %v2445_v17  ;;  %v317_v25 = vld [vmem:[%s3848_s30 + $0x598] sm:$0xff]  ;;  %v2462_v30 = vmul.f32 -1.442695, %v316_v22 }
 0x179   : > { %v3217_v31 = vpop.eup %3216  ;;  %2081 = vst [vmem:[%s3874_s17 + $0x4b8] sm:$0xff] %v3215_v28  ;;  %3236 = vpow2.f32 %v2446_v20  ;;  %v318_v28 = vld [vmem:[%s3848_s30 + $0x5a0] sm:$0xff] }
 0x17a   : > { %v3219_v33 = vpop.eup %3218  ;;  %2082 = vst [vmem:[%s3874_s17 + $0x4c0] sm:$0xff] %v3217_v31  ;;  %3238 = vpow2.f32 %v2447_v23  ;;  %v319_v31 = vld [vmem:[%s3848_s30 + $0x5a8] sm:$0xff] }
 0x17b   : > { %v3221_v35 = vpop.eup %3220  ;;  %2083 = vst [vmem:[%s3874_s17 + $0x4c8] sm:$0xff] %v3219_v33  ;;  %3240 = vpow2.f32 %v2448_v26  ;;  %v2463_v33 = vmul.f32 -1.442695, %v317_v25 }
 0x17c   : > { %v3223_v37 = vpop.eup %3222  ;;  %2084 = vst [vmem:[%s3874_s17 + $0x4d0] sm:$0xff] %v3221_v35  ;;  %3242 = vpow2.f32 %v2449_v29  ;;  %v2464_v35 = vmul.f32 -1.442695, %v318_v28 }
 0x17d   : > { %v3225_v38 = vpop.eup %3224  ;;  %2085 = vst [vmem:[%s3874_s17 + $0x4d8] sm:$0xff] %v3223_v37  ;;  %3244 = vpow2.f32 %v2450_v32  ;;  %v2465_v37 = vmul.f32 -1.442695, %v319_v31 }
 0x17e   : > { %v3227_v39 = vpop.eup %3226  ;;  %v1318_v40 = vadd.f32 1.0, %v3225_v38  ;;  %3246 = vpow2.f32 %v2451_v34 }
 0x17f   : > { %v3229_v41 = vpop.eup %3228  ;;  %v1319_v42 = vadd.f32 1.0, %v3227_v39  ;;  %3248 = vpow2.f32 %v2452_v36 }
 0x180   : > { %v3231_v43 = vpop.eup %3230  ;;  %3250 = vrcp.f32 %v1318_v40  ;;  %v1320_v44 = vadd.f32 1.0, %v3229_v41 }
 0x181   : > { %v3233_v45 = vpop.eup %3232  ;;  %3252 = vrcp.f32 %v1319_v42  ;;  %v1321_v46 = vadd.f32 1.0, %v3231_v43 }
 0x182   : > { %v3235_v47 = vpop.eup %3234  ;;  %3254 = vrcp.f32 %v1320_v44  ;;  %v1322_v48 = vadd.f32 1.0, %v3233_v45 }
 0x183   : > { %v3237_v49 = vpop.eup %3236  ;;  %3256 = vrcp.f32 %v1321_v46  ;;  %v1323_v50 = vadd.f32 1.0, %v3235_v47 }
 0x184   : > { %v3239_v51 = vpop.eup %3238  ;;  %3258 = vrcp.f32 %v1322_v48  ;;  %v1324_v52 = vadd.f32 1.0, %v3237_v49 }
 0x185   : > { %v3241_v53 = vpop.eup %3240  ;;  %3260 = vrcp.f32 %v1323_v50  ;;  %v1325_v54 = vadd.f32 1.0, %v3239_v51 }
 0x186   : > { %v3243_v55 = vpop.eup %3242  ;;  %3262 = vrcp.f32 %v1324_v52  ;;  %v1326_v56 = vadd.f32 1.0, %v3241_v53 }
 0x187   : > { %v3245_v58 = vpop.eup %3244  ;;  %3264 = vrcp.f32 %v1325_v54  ;;  %v1327_v59 = vadd.f32 1.0, %v3243_v55 }
 0x188   : > { %v3247_v61 = vpop.eup %3246  ;;  %3266 = vrcp.f32 %v1326_v56  ;;  %v1328_v62 = vadd.f32 1.0, %v3245_v58  ;;  %v320_v58 = vld [vmem:[%s3848_s30 + $0x5b0] sm:$0xff] }
 0x189   : > { %v3249_v0 = vpop.eup %3248  ;;  %3268 = vrcp.f32 %v1327_v59  ;;  %v1329_v1 = vadd.f32 1.0, %v3247_v61  ;;  %v321_v61 = vld [vmem:[%s3848_s30 + $0x5b8] sm:$0xff]  ;;  %v2466_v3 = vmul.f32 -1.442695, %v320_v58 }
 0x18a   : > { %v3251_v4 = vpop.eup %3250  ;;  %3270 = vrcp.f32 %v1328_v62  ;;  %v1330_v5 = vadd.f32 1.0, %v3249_v0  ;;  %v322_v0 = vld [vmem:[%s3848_s30 + $0x5c0] sm:$0xff]  ;;  %v2467_v7 = vmul.f32 -1.442695, %v321_v61 }
 0x18b   : > { %v3253_v8 = vpop.eup %3252  ;;  %2086 = vst [vmem:[%s3874_s17 + $0x4e0] sm:$0xff] %v3251_v4  ;;  %3272 = vrcp.f32 %v1329_v1  ;;  %v323_v4 = vld [vmem:[%s3848_s30 + $0x5c8] sm:$0xff]  ;;  %v2468_v10 = vmul.f32 -1.442695, %v322_v0 }
 0x18c   : > { %v3255_v11 = vpop.eup %3254  ;;  %2087 = vst [vmem:[%s3874_s17 + $0x4e8] sm:$0xff] %v3253_v8  ;;  %3274 = vrcp.f32 %v1330_v5  ;;  %v324_v8 = vld [vmem:[%s3848_s30 + $0x5d0] sm:$0xff]  ;;  %v2469_v13 = vmul.f32 -1.442695, %v323_v4 }
 0x18d   : > { %v3257_v14 = vpop.eup %3256  ;;  %2088 = vst [vmem:[%s3874_s17 + $0x4f0] sm:$0xff] %v3255_v11  ;;  %3276 = vpow2.f32 %v2453_v2  ;;  %v325_v11 = vld [vmem:[%s3848_s30 + $0x5d8] sm:$0xff]  ;;  %v2470_v16 = vmul.f32 -1.442695, %v324_v8 }
 0x18e   : > { %v3259_v17 = vpop.eup %3258  ;;  %2089 = vst [vmem:[%s3874_s17 + $0x4f8] sm:$0xff] %v3257_v14  ;;  %3278 = vpow2.f32 %v2454_v6  ;;  %v326_v14 = vld [vmem:[%s3848_s30 + $0x5e0] sm:$0xff]  ;;  %v2471_v19 = vmul.f32 -1.442695, %v325_v11 }
 0x18f   : > { %v3261_v20 = vpop.eup %3260  ;;  %2090 = vst [vmem:[%s3874_s17 + $0x500] sm:$0xff] %v3259_v17  ;;  %3280 = vpow2.f32 %v2455_v9  ;;  %v327_v17 = vld [vmem:[%s3848_s30 + $0x5e8] sm:$0xff]  ;;  %v2472_v22 = vmul.f32 -1.442695, %v326_v14 }
 0x190   : > { %v3263_v23 = vpop.eup %3262  ;;  %2091 = vst [vmem:[%s3874_s17 + $0x508] sm:$0xff] %v3261_v20  ;;  %3282 = vpow2.f32 %v2456_v12  ;;  %v328_v20 = vld [vmem:[%s3848_s30 + $0x5f0] sm:$0xff]  ;;  %v2473_v25 = vmul.f32 -1.442695, %v327_v17 }
 0x191   : > { %v3265_v26 = vpop.eup %3264  ;;  %2092 = vst [vmem:[%s3874_s17 + $0x510] sm:$0xff] %v3263_v23  ;;  %3284 = vpow2.f32 %v2457_v15  ;;  %v329_v23 = vld [vmem:[%s3848_s30 + $0x5f8] sm:$0xff]  ;;  %v2474_v28 = vmul.f32 -1.442695, %v328_v20 }
 0x192   : > { %v3267_v29 = vpop.eup %3266  ;;  %2093 = vst [vmem:[%s3874_s17 + $0x518] sm:$0xff] %v3265_v26  ;;  %3286 = vpow2.f32 %v2458_v18  ;;  %v330_v26 = vld [vmem:[%s3848_s30 + $0x600] sm:$0xff]  ;;  %v2475_v31 = vmul.f32 -1.442695, %v329_v23 }
 0x193   : > { %v3269_v32 = vpop.eup %3268  ;;  %2094 = vst [vmem:[%s3874_s17 + $0x520] sm:$0xff] %v3267_v29  ;;  %3288 = vpow2.f32 %v2459_v21  ;;  %v331_v29 = vld [vmem:[%s3848_s30 + $0x608] sm:$0xff] }
 0x194   : > { %v3271_v34 = vpop.eup %3270  ;;  %2095 = vst [vmem:[%s3874_s17 + $0x528] sm:$0xff] %v3269_v32  ;;  %3290 = vpow2.f32 %v2460_v24  ;;  %v332_v32 = vld [vmem:[%s3848_s30 + $0x610] sm:$0xff] }
 0x195   : > { %v3273_v36 = vpop.eup %3272  ;;  %2096 = vst [vmem:[%s3874_s17 + $0x530] sm:$0xff] %v3271_v34  ;;  %3292 = vpow2.f32 %v2461_v27  ;;  %v2476_v34 = vmul.f32 -1.442695, %v330_v26 }
 0x196   : > { %v3275_v38 = vpop.eup %3274  ;;  %2097 = vst [vmem:[%s3874_s17 + $0x538] sm:$0xff] %v3273_v36  ;;  %3294 = vpow2.f32 %v2462_v30  ;;  %v2477_v36 = vmul.f32 -1.442695, %v331_v29 }
 0x197   : > { %v3277_v39 = vpop.eup %3276  ;;  %2098 = vst [vmem:[%s3874_s17 + $0x540] sm:$0xff] %v3275_v38  ;;  %3296 = vpow2.f32 %v2463_v33  ;;  %v2478_v38 = vmul.f32 -1.442695, %v332_v32 }
 0x198   : > { %v3279_v40 = vpop.eup %3278  ;;  %v1331_v41 = vadd.f32 1.0, %v3277_v39  ;;  %3298 = vpow2.f32 %v2464_v35 }
 0x199   : > { %v3281_v42 = vpop.eup %3280  ;;  %v1332_v43 = vadd.f32 1.0, %v3279_v40  ;;  %3300 = vpow2.f32 %v2465_v37 }
 0x19a   : > { %v3283_v44 = vpop.eup %3282  ;;  %3302 = vrcp.f32 %v1331_v41  ;;  %v1333_v45 = vadd.f32 1.0, %v3281_v42 }
 0x19b   : > { %v3285_v46 = vpop.eup %3284  ;;  %3304 = vrcp.f32 %v1332_v43  ;;  %v1334_v47 = vadd.f32 1.0, %v3283_v44 }
 0x19c   : > { %v3287_v48 = vpop.eup %3286  ;;  %3306 = vrcp.f32 %v1333_v45  ;;  %v1335_v49 = vadd.f32 1.0, %v3285_v46 }
 0x19d   : > { %v3289_v50 = vpop.eup %3288  ;;  %3308 = vrcp.f32 %v1334_v47  ;;  %v1336_v51 = vadd.f32 1.0, %v3287_v48 }
 0x19e   : > { %v3291_v52 = vpop.eup %3290  ;;  %3310 = vrcp.f32 %v1335_v49  ;;  %v1337_v53 = vadd.f32 1.0, %v3289_v50 }
 0x19f   : > { %v3293_v54 = vpop.eup %3292  ;;  %3312 = vrcp.f32 %v1336_v51  ;;  %v1338_v55 = vadd.f32 1.0, %v3291_v52 }
 0x1a0   : > { %v3295_v56 = vpop.eup %3294  ;;  %3314 = vrcp.f32 %v1337_v53  ;;  %v1339_v57 = vadd.f32 1.0, %v3293_v54 }
 0x1a1   : > { %v3297_v59 = vpop.eup %3296  ;;  %3316 = vrcp.f32 %v1338_v55  ;;  %v1340_v60 = vadd.f32 1.0, %v3295_v56 }
 0x1a2   : > { %v3299_v62 = vpop.eup %3298  ;;  %3318 = vrcp.f32 %v1339_v57  ;;  %v1341_v63 = vadd.f32 1.0, %v3297_v59  ;;  %v333_v59 = vld [vmem:[%s3848_s30 + $0x618] sm:$0xff] }
 0x1a3   : > { %v3301_v1 = vpop.eup %3300  ;;  %3320 = vrcp.f32 %v1340_v60  ;;  %v1342_v2 = vadd.f32 1.0, %v3299_v62  ;;  %v334_v62 = vld [vmem:[%s3848_s30 + $0x620] sm:$0xff]  ;;  %v2479_v4 = vmul.f32 -1.442695, %v333_v59 }
 0x1a4   : > { %v3303_v5 = vpop.eup %3302  ;;  %3322 = vrcp.f32 %v1341_v63  ;;  %v1343_v6 = vadd.f32 1.0, %v3301_v1  ;;  %v335_v1 = vld [vmem:[%s3848_s30 + $0x628] sm:$0xff]  ;;  %v2480_v8 = vmul.f32 -1.442695, %v334_v62 }
 0x1a5   : > { %v3305_v9 = vpop.eup %3304  ;;  %2099 = vst [vmem:[%s3874_s17 + $0x548] sm:$0xff] %v3303_v5  ;;  %3324 = vrcp.f32 %v1342_v2  ;;  %v336_v5 = vld [vmem:[%s3848_s30 + $0x630] sm:$0xff]  ;;  %v2481_v11 = vmul.f32 -1.442695, %v335_v1 }
 0x1a6   : > { %v3307_v12 = vpop.eup %3306  ;;  %2100 = vst [vmem:[%s3874_s17 + $0x550] sm:$0xff] %v3305_v9  ;;  %3326 = vrcp.f32 %v1343_v6  ;;  %v337_v9 = vld [vmem:[%s3848_s30 + $0x638] sm:$0xff]  ;;  %v2482_v14 = vmul.f32 -1.442695, %v336_v5 }
 0x1a7   : > { %v3309_v15 = vpop.eup %3308  ;;  %2101 = vst [vmem:[%s3874_s17 + $0x558] sm:$0xff] %v3307_v12  ;;  %3328 = vpow2.f32 %v2466_v3  ;;  %v338_v12 = vld [vmem:[%s3848_s30 + $0x640] sm:$0xff]  ;;  %v2483_v17 = vmul.f32 -1.442695, %v337_v9 }
 0x1a8   : > { %v3311_v18 = vpop.eup %3310  ;;  %2102 = vst [vmem:[%s3874_s17 + $0x560] sm:$0xff] %v3309_v15  ;;  %3330 = vpow2.f32 %v2467_v7  ;;  %v339_v15 = vld [vmem:[%s3848_s30 + $0x648] sm:$0xff]  ;;  %v2484_v20 = vmul.f32 -1.442695, %v338_v12 }
 0x1a9   : > { %v3313_v21 = vpop.eup %3312  ;;  %2103 = vst [vmem:[%s3874_s17 + $0x568] sm:$0xff] %v3311_v18  ;;  %3332 = vpow2.f32 %v2468_v10  ;;  %v340_v18 = vld [vmem:[%s3848_s30 + $0x650] sm:$0xff]  ;;  %v2485_v23 = vmul.f32 -1.442695, %v339_v15 }
 0x1aa   : > { %v3315_v24 = vpop.eup %3314  ;;  %2104 = vst [vmem:[%s3874_s17 + $0x570] sm:$0xff] %v3313_v21  ;;  %3334 = vpow2.f32 %v2469_v13  ;;  %v341_v21 = vld [vmem:[%s3848_s30 + $0x658] sm:$0xff]  ;;  %v2486_v26 = vmul.f32 -1.442695, %v340_v18 }
 0x1ab   : > { %v3317_v27 = vpop.eup %3316  ;;  %2105 = vst [vmem:[%s3874_s17 + $0x578] sm:$0xff] %v3315_v24  ;;  %3336 = vpow2.f32 %v2470_v16  ;;  %v342_v24 = vld [vmem:[%s3848_s30 + $0x660] sm:$0xff]  ;;  %v2487_v29 = vmul.f32 -1.442695, %v341_v21 }
 0x1ac   : > { %v3319_v30 = vpop.eup %3318  ;;  %2106 = vst [vmem:[%s3874_s17 + $0x580] sm:$0xff] %v3317_v27  ;;  %3338 = vpow2.f32 %v2471_v19  ;;  %v343_v27 = vld [vmem:[%s3848_s30 + $0x668] sm:$0xff]  ;;  %v2488_v32 = vmul.f32 -1.442695, %v342_v24 }
 0x1ad   : > { %v3321_v33 = vpop.eup %3320  ;;  %2107 = vst [vmem:[%s3874_s17 + $0x588] sm:$0xff] %v3319_v30  ;;  %3340 = vpow2.f32 %v2472_v22  ;;  %v344_v30 = vld [vmem:[%s3848_s30 + $0x670] sm:$0xff] }
 0x1ae   : > { %v3323_v35 = vpop.eup %3322  ;;  %2108 = vst [vmem:[%s3874_s17 + $0x590] sm:$0xff] %v3321_v33  ;;  %3342 = vpow2.f32 %v2473_v25  ;;  %v345_v33 = vld [vmem:[%s3848_s30 + $0x678] sm:$0xff] }
 0x1af   : > { %v3325_v37 = vpop.eup %3324  ;;  %2109 = vst [vmem:[%s3874_s17 + $0x598] sm:$0xff] %v3323_v35  ;;  %3344 = vpow2.f32 %v2474_v28  ;;  %v2489_v35 = vmul.f32 -1.442695, %v343_v27 }
 0x1b0   : > { %v3327_v39 = vpop.eup %3326  ;;  %2110 = vst [vmem:[%s3874_s17 + $0x5a0] sm:$0xff] %v3325_v37  ;;  %3346 = vpow2.f32 %v2475_v31  ;;  %v2490_v37 = vmul.f32 -1.442695, %v344_v30 }
 0x1b1   : > { %v3329_v40 = vpop.eup %3328  ;;  %2111 = vst [vmem:[%s3874_s17 + $0x5a8] sm:$0xff] %v3327_v39  ;;  %3348 = vpow2.f32 %v2476_v34  ;;  %v2491_v39 = vmul.f32 -1.442695, %v345_v33 }
 0x1b2   : > { %v3331_v41 = vpop.eup %3330  ;;  %v1344_v42 = vadd.f32 1.0, %v3329_v40  ;;  %3350 = vpow2.f32 %v2477_v36 }
 0x1b3   : > { %v3333_v43 = vpop.eup %3332  ;;  %v1345_v44 = vadd.f32 1.0, %v3331_v41  ;;  %3352 = vpow2.f32 %v2478_v38 }
 0x1b4   : > { %v3335_v45 = vpop.eup %3334  ;;  %3354 = vrcp.f32 %v1344_v42  ;;  %v1346_v46 = vadd.f32 1.0, %v3333_v43 }
 0x1b5   : > { %v3337_v47 = vpop.eup %3336  ;;  %3356 = vrcp.f32 %v1345_v44  ;;  %v1347_v48 = vadd.f32 1.0, %v3335_v45 }
 0x1b6   : > { %v3339_v49 = vpop.eup %3338  ;;  %3358 = vrcp.f32 %v1346_v46  ;;  %v1348_v50 = vadd.f32 1.0, %v3337_v47 }
 0x1b7   : > { %v3341_v51 = vpop.eup %3340  ;;  %3360 = vrcp.f32 %v1347_v48  ;;  %v1349_v52 = vadd.f32 1.0, %v3339_v49 }
 0x1b8   : > { %v3343_v53 = vpop.eup %3342  ;;  %3362 = vrcp.f32 %v1348_v50  ;;  %v1350_v54 = vadd.f32 1.0, %v3341_v51 }
 0x1b9   : > { %v3345_v55 = vpop.eup %3344  ;;  %3364 = vrcp.f32 %v1349_v52  ;;  %v1351_v56 = vadd.f32 1.0, %v3343_v53 }
 0x1ba   : > { %v3347_v57 = vpop.eup %3346  ;;  %3366 = vrcp.f32 %v1350_v54  ;;  %v1352_v58 = vadd.f32 1.0, %v3345_v55 }
 0x1bb   : > { %v3349_v60 = vpop.eup %3348  ;;  %3368 = vrcp.f32 %v1351_v56  ;;  %v1353_v61 = vadd.f32 1.0, %v3347_v57 }
 0x1bc   : > { %v3351_v63 = vpop.eup %3350  ;;  %3370 = vrcp.f32 %v1352_v58  ;;  %v1354_v0 = vadd.f32 1.0, %v3349_v60  ;;  %v346_v60 = vld [vmem:[%s3848_s30 + $0x680] sm:$0xff] }
 0x1bd   : > { %v3353_v2 = vpop.eup %3352  ;;  %3372 = vrcp.f32 %v1353_v61  ;;  %v1355_v3 = vadd.f32 1.0, %v3351_v63  ;;  %v347_v63 = vld [vmem:[%s3848_s30 + $0x688] sm:$0xff]  ;;  %v2492_v5 = vmul.f32 -1.442695, %v346_v60 }
 0x1be   : > { %v3355_v6 = vpop.eup %3354  ;;  %3374 = vrcp.f32 %v1354_v0  ;;  %v1356_v7 = vadd.f32 1.0, %v3353_v2  ;;  %v348_v2 = vld [vmem:[%s3848_s30 + $0x690] sm:$0xff]  ;;  %v2493_v9 = vmul.f32 -1.442695, %v347_v63 }
 0x1bf   : > { %v3357_v10 = vpop.eup %3356  ;;  %2112 = vst [vmem:[%s3874_s17 + $0x5b0] sm:$0xff] %v3355_v6  ;;  %3376 = vrcp.f32 %v1355_v3  ;;  %v349_v6 = vld [vmem:[%s3848_s30 + $0x698] sm:$0xff]  ;;  %v2494_v12 = vmul.f32 -1.442695, %v348_v2 }
 0x1c0   : > { %v3359_v13 = vpop.eup %3358  ;;  %2113 = vst [vmem:[%s3874_s17 + $0x5b8] sm:$0xff] %v3357_v10  ;;  %3378 = vrcp.f32 %v1356_v7  ;;  %v350_v10 = vld [vmem:[%s3848_s30 + $0x6a0] sm:$0xff]  ;;  %v2495_v15 = vmul.f32 -1.442695, %v349_v6 }
 0x1c1   : > { %v3361_v16 = vpop.eup %3360  ;;  %2114 = vst [vmem:[%s3874_s17 + $0x5c0] sm:$0xff] %v3359_v13  ;;  %3380 = vpow2.f32 %v2479_v4  ;;  %v351_v13 = vld [vmem:[%s3848_s30 + $0x6a8] sm:$0xff]  ;;  %v2496_v18 = vmul.f32 -1.442695, %v350_v10 }
 0x1c2   : > { %v3363_v19 = vpop.eup %3362  ;;  %2115 = vst [vmem:[%s3874_s17 + $0x5c8] sm:$0xff] %v3361_v16  ;;  %3382 = vpow2.f32 %v2480_v8  ;;  %v352_v16 = vld [vmem:[%s3848_s30 + $0x6b0] sm:$0xff]  ;;  %v2497_v21 = vmul.f32 -1.442695, %v351_v13 }
 0x1c3   : > { %v3365_v22 = vpop.eup %3364  ;;  %2116 = vst [vmem:[%s3874_s17 + $0x5d0] sm:$0xff] %v3363_v19  ;;  %3384 = vpow2.f32 %v2481_v11  ;;  %v353_v19 = vld [vmem:[%s3848_s30 + $0x6b8] sm:$0xff]  ;;  %v2498_v24 = vmul.f32 -1.442695, %v352_v16 }
 0x1c4   : > { %v3367_v25 = vpop.eup %3366  ;;  %2117 = vst [vmem:[%s3874_s17 + $0x5d8] sm:$0xff] %v3365_v22  ;;  %3386 = vpow2.f32 %v2482_v14  ;;  %v354_v22 = vld [vmem:[%s3848_s30 + $0x6c0] sm:$0xff]  ;;  %v2499_v27 = vmul.f32 -1.442695, %v353_v19 }
 0x1c5   : > { %v3369_v28 = vpop.eup %3368  ;;  %2118 = vst [vmem:[%s3874_s17 + $0x5e0] sm:$0xff] %v3367_v25  ;;  %3388 = vpow2.f32 %v2483_v17  ;;  %v355_v25 = vld [vmem:[%s3848_s30 + $0x6c8] sm:$0xff]  ;;  %v2500_v30 = vmul.f32 -1.442695, %v354_v22 }
 0x1c6   : > { %v3371_v31 = vpop.eup %3370  ;;  %2119 = vst [vmem:[%s3874_s17 + $0x5e8] sm:$0xff] %v3369_v28  ;;  %3390 = vpow2.f32 %v2484_v20  ;;  %v356_v28 = vld [vmem:[%s3848_s30 + $0x6d0] sm:$0xff]  ;;  %v2501_v33 = vmul.f32 -1.442695, %v355_v25 }
 0x1c7   : > { %v3373_v34 = vpop.eup %3372  ;;  %2120 = vst [vmem:[%s3874_s17 + $0x5f0] sm:$0xff] %v3371_v31  ;;  %3392 = vpow2.f32 %v2485_v23  ;;  %v357_v31 = vld [vmem:[%s3848_s30 + $0x6d8] sm:$0xff] }
 0x1c8   : > { %v3375_v36 = vpop.eup %3374  ;;  %2121 = vst [vmem:[%s3874_s17 + $0x5f8] sm:$0xff] %v3373_v34  ;;  %3394 = vpow2.f32 %v2486_v26  ;;  %v358_v34 = vld [vmem:[%s3848_s30 + $0x6e0] sm:$0xff] }
 0x1c9   : > { %v3377_v38 = vpop.eup %3376  ;;  %2122 = vst [vmem:[%s3874_s17 + $0x600] sm:$0xff] %v3375_v36  ;;  %3396 = vpow2.f32 %v2487_v29  ;;  %v2502_v36 = vmul.f32 -1.442695, %v356_v28 }
 0x1ca   : > { %v3379_v40 = vpop.eup %3378  ;;  %2123 = vst [vmem:[%s3874_s17 + $0x608] sm:$0xff] %v3377_v38  ;;  %3398 = vpow2.f32 %v2488_v32  ;;  %v2503_v38 = vmul.f32 -1.442695, %v357_v31 }
 0x1cb   : > { %v3381_v41 = vpop.eup %3380  ;;  %2124 = vst [vmem:[%s3874_s17 + $0x610] sm:$0xff] %v3379_v40  ;;  %3400 = vpow2.f32 %v2489_v35  ;;  %v2504_v40 = vmul.f32 -1.442695, %v358_v34 }
 0x1cc   : > { %v3383_v42 = vpop.eup %3382  ;;  %v1357_v43 = vadd.f32 1.0, %v3381_v41  ;;  %3402 = vpow2.f32 %v2490_v37 }
 0x1cd   : > { %v3385_v44 = vpop.eup %3384  ;;  %v1358_v45 = vadd.f32 1.0, %v3383_v42  ;;  %3404 = vpow2.f32 %v2491_v39 }
 0x1ce   : > { %v3387_v46 = vpop.eup %3386  ;;  %3406 = vrcp.f32 %v1357_v43  ;;  %v1359_v47 = vadd.f32 1.0, %v3385_v44 }
 0x1cf   : > { %v3389_v48 = vpop.eup %3388  ;;  %3408 = vrcp.f32 %v1358_v45  ;;  %v1360_v49 = vadd.f32 1.0, %v3387_v46 }
 0x1d0   : > { %v3391_v50 = vpop.eup %3390  ;;  %3410 = vrcp.f32 %v1359_v47  ;;  %v1361_v51 = vadd.f32 1.0, %v3389_v48 }
 0x1d1   : > { %v3393_v52 = vpop.eup %3392  ;;  %3412 = vrcp.f32 %v1360_v49  ;;  %v1362_v53 = vadd.f32 1.0, %v3391_v50 }
 0x1d2   : > { %v3395_v54 = vpop.eup %3394  ;;  %3414 = vrcp.f32 %v1361_v51  ;;  %v1363_v55 = vadd.f32 1.0, %v3393_v52 }
 0x1d3   : > { %v3397_v56 = vpop.eup %3396  ;;  %3416 = vrcp.f32 %v1362_v53  ;;  %v1364_v57 = vadd.f32 1.0, %v3395_v54 }
 0x1d4   : > { %v3399_v58 = vpop.eup %3398  ;;  %3418 = vrcp.f32 %v1363_v55  ;;  %v1365_v59 = vadd.f32 1.0, %v3397_v56 }
 0x1d5   : > { %v3401_v61 = vpop.eup %3400  ;;  %3420 = vrcp.f32 %v1364_v57  ;;  %v1366_v62 = vadd.f32 1.0, %v3399_v58 }
 0x1d6   : > { %v3403_v0 = vpop.eup %3402  ;;  %3422 = vrcp.f32 %v1365_v59  ;;  %v1367_v1 = vadd.f32 1.0, %v3401_v61  ;;  %v359_v61 = vld [vmem:[%s3848_s30 + $0x6e8] sm:$0xff] }
 0x1d7   : > { %v3405_v3 = vpop.eup %3404  ;;  %3424 = vrcp.f32 %v1366_v62  ;;  %v1368_v4 = vadd.f32 1.0, %v3403_v0  ;;  %v360_v0 = vld [vmem:[%s3848_s30 + $0x6f0] sm:$0xff]  ;;  %v2505_v6 = vmul.f32 -1.442695, %v359_v61 }
 0x1d8   : > { %v3407_v7 = vpop.eup %3406  ;;  %3426 = vrcp.f32 %v1367_v1  ;;  %v1369_v8 = vadd.f32 1.0, %v3405_v3  ;;  %v361_v3 = vld [vmem:[%s3848_s30 + $0x6f8] sm:$0xff]  ;;  %v2506_v10 = vmul.f32 -1.442695, %v360_v0 }
 0x1d9   : > { %v3409_v11 = vpop.eup %3408  ;;  %2125 = vst [vmem:[%s3874_s17 + $0x618] sm:$0xff] %v3407_v7  ;;  %3428 = vrcp.f32 %v1368_v4  ;;  %v362_v7 = vld [vmem:[%s3848_s30 + $0x700] sm:$0xff]  ;;  %v2507_v13 = vmul.f32 -1.442695, %v361_v3 }
 0x1da   : > { %v3411_v14 = vpop.eup %3410  ;;  %2126 = vst [vmem:[%s3874_s17 + $0x620] sm:$0xff] %v3409_v11  ;;  %3430 = vrcp.f32 %v1369_v8  ;;  %v363_v11 = vld [vmem:[%s3848_s30 + $0x708] sm:$0xff]  ;;  %v2508_v16 = vmul.f32 -1.442695, %v362_v7 }
 0x1db   : > { %v3413_v17 = vpop.eup %3412  ;;  %2127 = vst [vmem:[%s3874_s17 + $0x628] sm:$0xff] %v3411_v14  ;;  %3432 = vpow2.f32 %v2492_v5  ;;  %v364_v14 = vld [vmem:[%s3848_s30 + $0x710] sm:$0xff]  ;;  %v2509_v19 = vmul.f32 -1.442695, %v363_v11 }
 0x1dc   : > { %v3415_v20 = vpop.eup %3414  ;;  %2128 = vst [vmem:[%s3874_s17 + $0x630] sm:$0xff] %v3413_v17  ;;  %3434 = vpow2.f32 %v2493_v9  ;;  %v365_v17 = vld [vmem:[%s3848_s30 + $0x718] sm:$0xff]  ;;  %v2510_v22 = vmul.f32 -1.442695, %v364_v14 }
 0x1dd   : > { %v3417_v23 = vpop.eup %3416  ;;  %2129 = vst [vmem:[%s3874_s17 + $0x638] sm:$0xff] %v3415_v20  ;;  %3436 = vpow2.f32 %v2494_v12  ;;  %v366_v20 = vld [vmem:[%s3848_s30 + $0x720] sm:$0xff]  ;;  %v2511_v25 = vmul.f32 -1.442695, %v365_v17 }
 0x1de   : > { %v3419_v26 = vpop.eup %3418  ;;  %2130 = vst [vmem:[%s3874_s17 + $0x640] sm:$0xff] %v3417_v23  ;;  %3438 = vpow2.f32 %v2495_v15  ;;  %v367_v23 = vld [vmem:[%s3848_s30 + $0x728] sm:$0xff]  ;;  %v2512_v28 = vmul.f32 -1.442695, %v366_v20 }
 0x1df   : > { %v3421_v29 = vpop.eup %3420  ;;  %2131 = vst [vmem:[%s3874_s17 + $0x648] sm:$0xff] %v3419_v26  ;;  %3440 = vpow2.f32 %v2496_v18  ;;  %v368_v26 = vld [vmem:[%s3848_s30 + $0x730] sm:$0xff]  ;;  %v2513_v31 = vmul.f32 -1.442695, %v367_v23 }
 0x1e0   : > { %v3423_v32 = vpop.eup %3422  ;;  %2132 = vst [vmem:[%s3874_s17 + $0x650] sm:$0xff] %v3421_v29  ;;  %3442 = vpow2.f32 %v2497_v21  ;;  %v369_v29 = vld [vmem:[%s3848_s30 + $0x738] sm:$0xff]  ;;  %v2514_v34 = vmul.f32 -1.442695, %v368_v26 }
 0x1e1   : > { %v3425_v35 = vpop.eup %3424  ;;  %2133 = vst [vmem:[%s3874_s17 + $0x658] sm:$0xff] %v3423_v32  ;;  %3444 = vpow2.f32 %v2498_v24  ;;  %v370_v32 = vld [vmem:[%s3848_s30 + $0x740] sm:$0xff] }
 0x1e2   : > { %v3427_v37 = vpop.eup %3426  ;;  %2134 = vst [vmem:[%s3874_s17 + $0x660] sm:$0xff] %v3425_v35  ;;  %3446 = vpow2.f32 %v2499_v27  ;;  %v371_v35 = vld [vmem:[%s3848_s30 + $0x748] sm:$0xff] }
 0x1e3   : > { %v3429_v39 = vpop.eup %3428  ;;  %2135 = vst [vmem:[%s3874_s17 + $0x668] sm:$0xff] %v3427_v37  ;;  %3448 = vpow2.f32 %v2500_v30  ;;  %v2515_v37 = vmul.f32 -1.442695, %v369_v29 }
 0x1e4   : > { %v3431_v41 = vpop.eup %3430  ;;  %2136 = vst [vmem:[%s3874_s17 + $0x670] sm:$0xff] %v3429_v39  ;;  %3450 = vpow2.f32 %v2501_v33  ;;  %v2516_v39 = vmul.f32 -1.442695, %v370_v32 }
 0x1e5   : > { %v3433_v42 = vpop.eup %3432  ;;  %2137 = vst [vmem:[%s3874_s17 + $0x678] sm:$0xff] %v3431_v41  ;;  %3452 = vpow2.f32 %v2502_v36  ;;  %v2517_v41 = vmul.f32 -1.442695, %v371_v35 }
 0x1e6   : > { %v3435_v43 = vpop.eup %3434  ;;  %v1370_v44 = vadd.f32 1.0, %v3433_v42  ;;  %3454 = vpow2.f32 %v2503_v38 }
 0x1e7   : > { %v3437_v45 = vpop.eup %3436  ;;  %v1371_v46 = vadd.f32 1.0, %v3435_v43  ;;  %3456 = vpow2.f32 %v2504_v40 }
 0x1e8   : > { %v3439_v47 = vpop.eup %3438  ;;  %3458 = vrcp.f32 %v1370_v44  ;;  %v1372_v48 = vadd.f32 1.0, %v3437_v45 }
 0x1e9   : > { %v3441_v49 = vpop.eup %3440  ;;  %3460 = vrcp.f32 %v1371_v46  ;;  %v1373_v50 = vadd.f32 1.0, %v3439_v47 }
 0x1ea   : > { %v3443_v51 = vpop.eup %3442  ;;  %3462 = vrcp.f32 %v1372_v48  ;;  %v1374_v52 = vadd.f32 1.0, %v3441_v49 }
 0x1eb   : > { %v3445_v53 = vpop.eup %3444  ;;  %3464 = vrcp.f32 %v1373_v50  ;;  %v1375_v54 = vadd.f32 1.0, %v3443_v51 }
 0x1ec   : > { %v3447_v55 = vpop.eup %3446  ;;  %3466 = vrcp.f32 %v1374_v52  ;;  %v1376_v56 = vadd.f32 1.0, %v3445_v53 }
 0x1ed   : > { %v3449_v57 = vpop.eup %3448  ;;  %3468 = vrcp.f32 %v1375_v54  ;;  %v1377_v58 = vadd.f32 1.0, %v3447_v55 }
 0x1ee   : > { %v3451_v59 = vpop.eup %3450  ;;  %3470 = vrcp.f32 %v1376_v56  ;;  %v1378_v60 = vadd.f32 1.0, %v3449_v57 }
 0x1ef   : > { %v3453_v62 = vpop.eup %3452  ;;  %3472 = vrcp.f32 %v1377_v58  ;;  %v1379_v63 = vadd.f32 1.0, %v3451_v59 }
 0x1f0   : > { %v3455_v1 = vpop.eup %3454  ;;  %3474 = vrcp.f32 %v1378_v60  ;;  %v1380_v2 = vadd.f32 1.0, %v3453_v62  ;;  %v372_v62 = vld [vmem:[%s3848_s30 + $0x750] sm:$0xff] }
 0x1f1   : > { %v3457_v4 = vpop.eup %3456  ;;  %3476 = vrcp.f32 %v1379_v63  ;;  %v1381_v5 = vadd.f32 1.0, %v3455_v1  ;;  %v373_v1 = vld [vmem:[%s3848_s30 + $0x758] sm:$0xff]  ;;  %v2518_v7 = vmul.f32 -1.442695, %v372_v62 }
 0x1f2   : > { %v3459_v8 = vpop.eup %3458  ;;  %3478 = vrcp.f32 %v1380_v2  ;;  %v1382_v9 = vadd.f32 1.0, %v3457_v4  ;;  %v374_v4 = vld [vmem:[%s3848_s30 + $0x760] sm:$0xff]  ;;  %v2519_v11 = vmul.f32 -1.442695, %v373_v1 }
 0x1f3   : > { %v3461_v12 = vpop.eup %3460  ;;  %2138 = vst [vmem:[%s3874_s17 + $0x680] sm:$0xff] %v3459_v8  ;;  %3480 = vrcp.f32 %v1381_v5  ;;  %v375_v8 = vld [vmem:[%s3848_s30 + $0x768] sm:$0xff]  ;;  %v2520_v14 = vmul.f32 -1.442695, %v374_v4 }
 0x1f4   : > { %v3463_v15 = vpop.eup %3462  ;;  %2139 = vst [vmem:[%s3874_s17 + $0x688] sm:$0xff] %v3461_v12  ;;  %3482 = vrcp.f32 %v1382_v9  ;;  %v376_v12 = vld [vmem:[%s3848_s30 + $0x770] sm:$0xff]  ;;  %v2521_v17 = vmul.f32 -1.442695, %v375_v8 }
 0x1f5   : > { %v3465_v18 = vpop.eup %3464  ;;  %2140 = vst [vmem:[%s3874_s17 + $0x690] sm:$0xff] %v3463_v15  ;;  %3484 = vpow2.f32 %v2505_v6  ;;  %v377_v15 = vld [vmem:[%s3848_s30 + $0x778] sm:$0xff]  ;;  %v2522_v20 = vmul.f32 -1.442695, %v376_v12 }
 0x1f6   : > { %v3467_v21 = vpop.eup %3466  ;;  %2141 = vst [vmem:[%s3874_s17 + $0x698] sm:$0xff] %v3465_v18  ;;  %3486 = vpow2.f32 %v2506_v10  ;;  %v378_v18 = vld [vmem:[%s3848_s30 + $0x780] sm:$0xff]  ;;  %v2523_v23 = vmul.f32 -1.442695, %v377_v15 }
 0x1f7   : > { %v3469_v24 = vpop.eup %3468  ;;  %2142 = vst [vmem:[%s3874_s17 + $0x6a0] sm:$0xff] %v3467_v21  ;;  %3488 = vpow2.f32 %v2507_v13  ;;  %v379_v21 = vld [vmem:[%s3848_s30 + $0x788] sm:$0xff]  ;;  %v2524_v26 = vmul.f32 -1.442695, %v378_v18 }
 0x1f8   : > { %v3471_v27 = vpop.eup %3470  ;;  %2143 = vst [vmem:[%s3874_s17 + $0x6a8] sm:$0xff] %v3469_v24  ;;  %3490 = vpow2.f32 %v2508_v16  ;;  %v380_v24 = vld [vmem:[%s3848_s30 + $0x790] sm:$0xff]  ;;  %v2525_v29 = vmul.f32 -1.442695, %v379_v21 }
 0x1f9   : > { %v3473_v30 = vpop.eup %3472  ;;  %2144 = vst [vmem:[%s3874_s17 + $0x6b0] sm:$0xff] %v3471_v27  ;;  %3492 = vpow2.f32 %v2509_v19  ;;  %v381_v27 = vld [vmem:[%s3848_s30 + $0x798] sm:$0xff]  ;;  %v2526_v32 = vmul.f32 -1.442695, %v380_v24 }
 0x1fa   : > { %v3475_v33 = vpop.eup %3474  ;;  %2145 = vst [vmem:[%s3874_s17 + $0x6b8] sm:$0xff] %v3473_v30  ;;  %3494 = vpow2.f32 %v2510_v22  ;;  %v382_v30 = vld [vmem:[%s3848_s30 + $0x7a0] sm:$0xff]  ;;  %v2527_v35 = vmul.f32 -1.442695, %v381_v27 }
 0x1fb   : > { %v3477_v36 = vpop.eup %3476  ;;  %2146 = vst [vmem:[%s3874_s17 + $0x6c0] sm:$0xff] %v3475_v33  ;;  %3496 = vpow2.f32 %v2511_v25  ;;  %v383_v33 = vld [vmem:[%s3848_s30 + $0x7a8] sm:$0xff] }
 0x1fc   : > { %v3479_v38 = vpop.eup %3478  ;;  %2147 = vst [vmem:[%s3874_s17 + $0x6c8] sm:$0xff] %v3477_v36  ;;  %3498 = vpow2.f32 %v2512_v28  ;;  %v384_v36 = vld [vmem:[%s3848_s30 + $0x7b0] sm:$0xff] }
 0x1fd   : > { %v3481_v40 = vpop.eup %3480  ;;  %2148 = vst [vmem:[%s3874_s17 + $0x6d0] sm:$0xff] %v3479_v38  ;;  %3500 = vpow2.f32 %v2513_v31  ;;  %v2528_v38 = vmul.f32 -1.442695, %v382_v30 }
 0x1fe   : > { %v3483_v42 = vpop.eup %3482  ;;  %2149 = vst [vmem:[%s3874_s17 + $0x6d8] sm:$0xff] %v3481_v40  ;;  %3502 = vpow2.f32 %v2514_v34  ;;  %v2529_v40 = vmul.f32 -1.442695, %v383_v33 }
 0x1ff   : > { %v3485_v43 = vpop.eup %3484  ;;  %2150 = vst [vmem:[%s3874_s17 + $0x6e0] sm:$0xff] %v3483_v42  ;;  %3504 = vpow2.f32 %v2515_v37  ;;  %v2530_v42 = vmul.f32 -1.442695, %v384_v36 }
 0x200   : > { %v3487_v44 = vpop.eup %3486  ;;  %v1383_v45 = vadd.f32 1.0, %v3485_v43  ;;  %3506 = vpow2.f32 %v2516_v39 }
 0x201   : > { %v3489_v46 = vpop.eup %3488  ;;  %v1384_v47 = vadd.f32 1.0, %v3487_v44  ;;  %3508 = vpow2.f32 %v2517_v41 }
 0x202   : > { %v3491_v48 = vpop.eup %3490  ;;  %3510 = vrcp.f32 %v1383_v45  ;;  %v1385_v49 = vadd.f32 1.0, %v3489_v46 }
 0x203   : > { %v3493_v50 = vpop.eup %3492  ;;  %3512 = vrcp.f32 %v1384_v47  ;;  %v1386_v51 = vadd.f32 1.0, %v3491_v48 }
 0x204   : > { %v3495_v52 = vpop.eup %3494  ;;  %3514 = vrcp.f32 %v1385_v49  ;;  %v1387_v53 = vadd.f32 1.0, %v3493_v50 }
 0x205   : > { %v3497_v54 = vpop.eup %3496  ;;  %3516 = vrcp.f32 %v1386_v51  ;;  %v1388_v55 = vadd.f32 1.0, %v3495_v52 }
 0x206   : > { %v3499_v56 = vpop.eup %3498  ;;  %3518 = vrcp.f32 %v1387_v53  ;;  %v1389_v57 = vadd.f32 1.0, %v3497_v54 }
 0x207   : > { %v3501_v58 = vpop.eup %3500  ;;  %3520 = vrcp.f32 %v1388_v55  ;;  %v1390_v59 = vadd.f32 1.0, %v3499_v56 }
 0x208   : > { %v3503_v60 = vpop.eup %3502  ;;  %3522 = vrcp.f32 %v1389_v57  ;;  %v1391_v61 = vadd.f32 1.0, %v3501_v58 }
 0x209   : > { %v3505_v63 = vpop.eup %3504  ;;  %3524 = vrcp.f32 %v1390_v59  ;;  %v1392_v0 = vadd.f32 1.0, %v3503_v60 }
 0x20a   : > { %v3507_v2 = vpop.eup %3506  ;;  %3526 = vrcp.f32 %v1391_v61  ;;  %v1393_v3 = vadd.f32 1.0, %v3505_v63  ;;  %v385_v63 = vld [vmem:[%s3848_s30 + $0x7b8] sm:$0xff] }
 0x20b   : > { %v3509_v5 = vpop.eup %3508  ;;  %3528 = vrcp.f32 %v1392_v0  ;;  %v1394_v6 = vadd.f32 1.0, %v3507_v2  ;;  %v386_v2 = vld [vmem:[%s3848_s30 + $0x7c0] sm:$0xff]  ;;  %v2531_v8 = vmul.f32 -1.442695, %v385_v63 }
 0x20c   : > { %v3511_v9 = vpop.eup %3510  ;;  %3530 = vrcp.f32 %v1393_v3  ;;  %v1395_v10 = vadd.f32 1.0, %v3509_v5  ;;  %v387_v5 = vld [vmem:[%s3848_s30 + $0x7c8] sm:$0xff]  ;;  %v2532_v12 = vmul.f32 -1.442695, %v386_v2 }
 0x20d   : > { %v3513_v13 = vpop.eup %3512  ;;  %2151 = vst [vmem:[%s3874_s17 + $0x6e8] sm:$0xff] %v3511_v9  ;;  %3532 = vrcp.f32 %v1394_v6  ;;  %v388_v9 = vld [vmem:[%s3848_s30 + $0x7d0] sm:$0xff]  ;;  %v2533_v15 = vmul.f32 -1.442695, %v387_v5 }
 0x20e   : > { %v3515_v16 = vpop.eup %3514  ;;  %2152 = vst [vmem:[%s3874_s17 + $0x6f0] sm:$0xff] %v3513_v13  ;;  %3534 = vrcp.f32 %v1395_v10  ;;  %v389_v13 = vld [vmem:[%s3848_s30 + $0x7d8] sm:$0xff]  ;;  %v2534_v18 = vmul.f32 -1.442695, %v388_v9 }
 0x20f   : > { %v3517_v19 = vpop.eup %3516  ;;  %2153 = vst [vmem:[%s3874_s17 + $0x6f8] sm:$0xff] %v3515_v16  ;;  %3536 = vpow2.f32 %v2518_v7  ;;  %v390_v16 = vld [vmem:[%s3848_s30 + $0x7e0] sm:$0xff]  ;;  %v2535_v21 = vmul.f32 -1.442695, %v389_v13 }
 0x210   : > { %v3519_v22 = vpop.eup %3518  ;;  %2154 = vst [vmem:[%s3874_s17 + $0x700] sm:$0xff] %v3517_v19  ;;  %3538 = vpow2.f32 %v2519_v11  ;;  %v391_v19 = vld [vmem:[%s3848_s30 + $0x7e8] sm:$0xff]  ;;  %v2536_v24 = vmul.f32 -1.442695, %v390_v16 }
 0x211   : > { %v3521_v25 = vpop.eup %3520  ;;  %2155 = vst [vmem:[%s3874_s17 + $0x708] sm:$0xff] %v3519_v22  ;;  %3540 = vpow2.f32 %v2520_v14  ;;  %v392_v22 = vld [vmem:[%s3848_s30 + $0x7f0] sm:$0xff]  ;;  %v2537_v27 = vmul.f32 -1.442695, %v391_v19 }
 0x212   : > { %v3523_v28 = vpop.eup %3522  ;;  %2156 = vst [vmem:[%s3874_s17 + $0x710] sm:$0xff] %v3521_v25  ;;  %3542 = vpow2.f32 %v2521_v17  ;;  %v393_v25 = vld [vmem:[%s3848_s30 + $0x7f8] sm:$0xff] }
 0x213   : > { %v3525_v31 = vpop.eup %3524  ;;  %2157 = vst [vmem:[%s3874_s17 + $0x718] sm:$0xff] %v3523_v28  ;;  %3544 = vpow2.f32 %v2522_v20 }
 0x214   : > { %v3527_v34 = vpop.eup %3526  ;;  %2158 = vst [vmem:[%s3874_s17 + $0x720] sm:$0xff] %v3525_v31  ;;  %3546 = vpow2.f32 %v2523_v23  ;;  %v2539_v31 = vmul.f32 -1.442695, %v393_v25 }
 0x215   : > { %v3529_v37 = vpop.eup %3528  ;;  %2159 = vst [vmem:[%s3874_s17 + $0x728] sm:$0xff] %v3527_v34  ;;  %3548 = vpow2.f32 %v2524_v26 }
 0x216   : > { %v3531_v39 = vpop.eup %3530  ;;  %2160 = vst [vmem:[%s3874_s17 + $0x730] sm:$0xff] %v3529_v37  ;;  %3550 = vpow2.f32 %v2525_v29  ;;  %v2538_v29 = vmul.f32 -1.442695, %v392_v22 }
 0x217   : > { %v3533_v41 = vpop.eup %3532  ;;  %2161 = vst [vmem:[%s3874_s17 + $0x738] sm:$0xff] %v3531_v39  ;;  %3552 = vpow2.f32 %v2526_v32 }
 0x218   : > { %v3535_v43 = vpop.eup %3534  ;;  %2162 = vst [vmem:[%s3874_s17 + $0x740] sm:$0xff] %v3533_v41  ;;  %3554 = vpow2.f32 %v2527_v35 }
 0x219   : > { %v3537_v44 = vpop.eup %3536  ;;  %2163 = vst [vmem:[%s3874_s17 + $0x748] sm:$0xff] %v3535_v43  ;;  %3556 = vpow2.f32 %v2528_v38 }
 0x21a   : > { %v3539_v45 = vpop.eup %3538  ;;  %v1396_v46 = vadd.f32 1.0, %v3537_v44  ;;  %3558 = vpow2.f32 %v2529_v40 }
 0x21b   : > { %v3541_v47 = vpop.eup %3540  ;;  %v1397_v48 = vadd.f32 1.0, %v3539_v45  ;;  %3560 = vpow2.f32 %v2530_v42 }
 0x21c   : > { %v3543_v49 = vpop.eup %3542  ;;  %3562 = vrcp.f32 %v1396_v46  ;;  %v1398_v50 = vadd.f32 1.0, %v3541_v47 }
 0x21d   : > { %v3545_v51 = vpop.eup %3544  ;;  %3564 = vrcp.f32 %v1397_v48  ;;  %v1399_v52 = vadd.f32 1.0, %v3543_v49 }
 0x21e   : > { %v3547_v53 = vpop.eup %3546  ;;  %3566 = vrcp.f32 %v1398_v50  ;;  %v1400_v54 = vadd.f32 1.0, %v3545_v51 }
 0x21f   : > { %v3549_v55 = vpop.eup %3548  ;;  %3568 = vrcp.f32 %v1399_v52  ;;  %v1401_v56 = vadd.f32 1.0, %v3547_v53 }
 0x220   : > { %v3551_v57 = vpop.eup %3550  ;;  %3570 = vrcp.f32 %v1400_v54  ;;  %v1402_v58 = vadd.f32 1.0, %v3549_v55 }
 0x221   : > { %v3553_v59 = vpop.eup %3552  ;;  %3572 = vrcp.f32 %v1401_v56  ;;  %v1403_v60 = vadd.f32 1.0, %v3551_v57 }
 0x222   : > { %v3555_v61 = vpop.eup %3554  ;;  %3574 = vrcp.f32 %v1402_v58  ;;  %v1404_v62 = vadd.f32 1.0, %v3553_v59 }
 0x223   : > { %v3557_v0 = vpop.eup %3556  ;;  %3576 = vrcp.f32 %v1403_v60  ;;  %v1405_v1 = vadd.f32 1.0, %v3555_v61 }
 0x224   : > { %v3559_v3 = vpop.eup %3558  ;;  %3578 = vrcp.f32 %v1404_v62  ;;  %v1406_v4 = vadd.f32 1.0, %v3557_v0 }
 0x225   : > { %v3561_v6 = vpop.eup %3560  ;;  %3580 = vrcp.f32 %v1405_v1  ;;  %v1407_v7 = vadd.f32 1.0, %v3559_v3 }
 0x226   : > { %v3563_v10 = vpop.eup %3562  ;;  %3582 = vrcp.f32 %v1406_v4  ;;  %v1408_v11 = vadd.f32 1.0, %v3561_v6 }
 0x227   : > { %v3565_v14 = vpop.eup %3564  ;;  %2164 = vst [vmem:[%s3874_s17 + $0x750] sm:$0xff] %v3563_v10  ;;  %3584 = vrcp.f32 %v1407_v7 }
 0x228   : > { %v3567_v17 = vpop.eup %3566  ;;  %2165 = vst [vmem:[%s3874_s17 + $0x758] sm:$0xff] %v3565_v14  ;;  %3586 = vrcp.f32 %v1408_v11 }
 0x229   : > { %v3569_v20 = vpop.eup %3568  ;;  %2166 = vst [vmem:[%s3874_s17 + $0x760] sm:$0xff] %v3567_v17  ;;  %3588 = vpow2.f32 %v2531_v8 }
 0x22a   : > { %v3571_v23 = vpop.eup %3570  ;;  %2167 = vst [vmem:[%s3874_s17 + $0x768] sm:$0xff] %v3569_v20  ;;  %3590 = vpow2.f32 %v2532_v12 }
 0x22b   : > { %v3573_v26 = vpop.eup %3572  ;;  %2168 = vst [vmem:[%s3874_s17 + $0x770] sm:$0xff] %v3571_v23  ;;  %3592 = vpow2.f32 %v2533_v15 }
 0x22c   : > { %v3575_v28 = vpop.eup %3574  ;;  %2169 = vst [vmem:[%s3874_s17 + $0x778] sm:$0xff] %v3573_v26  ;;  %3594 = vpow2.f32 %v2534_v18 }
 0x22d   : > { %v3577_v30 = vpop.eup %3576  ;;  %2170 = vst [vmem:[%s3874_s17 + $0x780] sm:$0xff] %v3575_v28  ;;  %3596 = vpow2.f32 %v2535_v21 }
 0x22e   : > { %v3579_v32 = vpop.eup %3578  ;;  %2171 = vst [vmem:[%s3874_s17 + $0x788] sm:$0xff] %v3577_v30  ;;  %3598 = vpow2.f32 %v2536_v24 }
 0x22f   : > { %v3581_v33 = vpop.eup %3580  ;;  %2172 = vst [vmem:[%s3874_s17 + $0x790] sm:$0xff] %v3579_v32  ;;  %3600 = vpow2.f32 %v2537_v27 }
 0x230   : > { %v3583_v34 = vpop.eup %3582  ;;  %2173 = vst [vmem:[%s3874_s17 + $0x798] sm:$0xff] %v3581_v33  ;;  %3602 = vpow2.f32 %v2538_v29 }
 0x231   : > { %v3585_v35 = vpop.eup %3584  ;;  %2174 = vst [vmem:[%s3874_s17 + $0x7a0] sm:$0xff] %v3583_v34  ;;  %3604 = vpow2.f32 %v2539_v31 }
 0x232   : > { %v3587_v36 = vpop.eup %3586  ;;  %2175 = vst [vmem:[%s3874_s17 + $0x7a8] sm:$0xff] %v3585_v35 }
 0x233   : > { %v3589_v37 = vpop.eup %3588  ;;  %2176 = vst [vmem:[%s3874_s17 + $0x7b0] sm:$0xff] %v3587_v36 }
 0x234   : > { %v3591_v38 = vpop.eup %3590  ;;  %v1409_v39 = vadd.f32 1.0, %v3589_v37 }
 0x235   : > { %v3593_v40 = vpop.eup %3592  ;;  %v1410_v41 = vadd.f32 1.0, %v3591_v38 }
 0x236   : > { %v3595_v42 = vpop.eup %3594  ;;  %3606 = vrcp.f32 %v1409_v39  ;;  %v1411_v43 = vadd.f32 1.0, %v3593_v40 }
 0x237   : > { %v3597_v44 = vpop.eup %3596  ;;  %3608 = vrcp.f32 %v1410_v41  ;;  %v1412_v45 = vadd.f32 1.0, %v3595_v42 }
 0x238   : > { %v3599_v46 = vpop.eup %3598  ;;  %3610 = vrcp.f32 %v1411_v43  ;;  %v1413_v47 = vadd.f32 1.0, %v3597_v44 }
 0x239   : > { %v3601_v48 = vpop.eup %3600  ;;  %3612 = vrcp.f32 %v1412_v45  ;;  %v1414_v49 = vadd.f32 1.0, %v3599_v46 }
 0x23a   : > { %v3603_v50 = vpop.eup %3602  ;;  %3614 = vrcp.f32 %v1413_v47  ;;  %v1415_v51 = vadd.f32 1.0, %v3601_v48 }
 0x23b   : > { %v3605_v52 = vpop.eup %3604  ;;  %3616 = vrcp.f32 %v1414_v49  ;;  %v1416_v53 = vadd.f32 1.0, %v3603_v50 }
 0x23c   : > { %3618 = vrcp.f32 %v1415_v51  ;;  %v1417_v54 = vadd.f32 1.0, %v3605_v52 }
 0x23d   : > { %3620 = vrcp.f32 %v1416_v53 }
 0x23e   : > { %3622 = vrcp.f32 %v1417_v54 }
 0x240   : > { %v3607_v55 = vpop.eup %3606 }
 0x241   : > { %v3609_v56 = vpop.eup %3608  ;;  %2177 = vst [vmem:[%s3874_s17 + $0x7b8] sm:$0xff] %v3607_v55 }
 0x242   : > { %v3611_v57 = vpop.eup %3610  ;;  %2178 = vst [vmem:[%s3874_s17 + $0x7c0] sm:$0xff] %v3609_v56 }
 0x243   : > { %v3613_v58 = vpop.eup %3612  ;;  %2179 = vst [vmem:[%s3874_s17 + $0x7c8] sm:$0xff] %v3611_v57 }
 0x244   : > { %v3615_v59 = vpop.eup %3614  ;;  %2180 = vst [vmem:[%s3874_s17 + $0x7d0] sm:$0xff] %v3613_v58 }
 0x245   : > { %v3617_v60 = vpop.eup %3616  ;;  %2181 = vst [vmem:[%s3874_s17 + $0x7d8] sm:$0xff] %v3615_v59 }
 0x246   : > { %v3619_v61 = vpop.eup %3618  ;;  %2182 = vst [vmem:[%s3874_s17 + $0x7e0] sm:$0xff] %v3617_v60 }
 0x247   : > { %v3621_v62 = vpop.eup %3620  ;;  %2183 = vst [vmem:[%s3874_s17 + $0x7e8] sm:$0xff] %v3619_v61 }
 0x248   : > { %v3623_v63 = vpop.eup %3622  ;;  %2184 = vst [vmem:[%s3874_s17 + $0x7f0] sm:$0xff] %v3621_v62 }
 0x249   : > { %2185 = vst [vmem:[%s3874_s17 + $0x7f8] sm:$0xff] %v3623_v63 }
 0x24a   : > { %3667 = shalt.err (!%p3664_p2)
}
 0x24b   : > { %s3668_s13 = scalar_lea.hbm %s4372_s2, 32768  ;;  %s3672_s20 = scalar_lea.hbm %s4422_s1, 65536 }
 0x24c   : > { %p3669_p4 = scmp.ne.s32.totalorder %s4372_s2, %s3668_s13  ;;  %p3673_p9 = scmp.lt.u32.totalorder %s4372_s2, %s4422_s1 }
 0x24d   : > { %p3674_p1 = scmp.lt.u32.totalorder %s3672_s20, %s3668_s13  ;;  %p3676_p6 = scmp.lt.u32.totalorder %s3668_s13, %s4372_s2 }
 0x24e   : > { %p3670_p5 = pnand %p3669_p4, %p4429_p11 }
 0x24f   : > { %p3675_p3 = por %p3674_p1, %p3673_p9 }
 0x250   : > { %p3671_p7 = pneg %p3670_p5 }
 0x251   : > { %p3677_p12 = por %p3676_p6, %p3675_p3 }
 0x253   : > { %p3678_p13 = pnand %p3677_p12, %p3671_p7 }
 0x255   : > { %3681 = shalt.err (!%p3678_p13)
}
 0x256   : > { %s3726_s24 = smov 1024   ;;  %s3727_s26 = smov 64  }
 0x257   : > { %2552 = dma.vmem_to_hbm [thread:$0]  (%p4429_p11), %s4374_s27, 32768, %s4372_s2, %s2187_s10, %s3726_s24, %s3726_s24, %s3727_s26  }
 0x258 PF: > { %s2216_s30 = sand.u32 1, %s3708_s6   ;;  %p4430_p8 = scmp.ne.s32.totalorder %s4427_s19, 0 }
 0x259   : > { %p4431_p10 = scmp.ge.s32.totalorder %s3720_s9, 2  ;;  %s2217_s17 = scalar_lea.sflag [#allocation4], %s2216_s30 }
 0x25b   : > { %p2559_p0 = pnand %p4431_p10, %p4430_p8 }
 0x25d   : > { %3703 = dma.done.wait (!%p2559_p0), %s2217_s17, 32768  }
 0x25e   : > { %3705 = vsyncadd (!%p2559_p0), %s2217_s17, 4294934528  ;;  %p14_p2 = scmp.ge.s32.totalorder %s3763_s12, 4   ;;  %s4432_s6 = smov %s3712_s7 }
 0x25f   : > { %s4433_s7 = smov %s3716_s8  ;;  %s4434_s8 = smov %s3775_s15 }
 0x260   : > { %s4435_s9 = smov %s3763_s12  ;;  %16 = sbr.rel (!%p14_p2) target bundleno = 5 (0x5), region = 69 }
 0x267   :  { %2222 = vsyncpa [#allocation3], 1 }
 0x268   :  { %2224 = vsyncpa [#allocation3 + $0x1], 1 }
 0x269   :  { %2225 = vsyncpa [#allocation4], 1 }
 0x26a   :  { %2227 = vsyncpa [#allocation4 + $0x1], 1 }

</bundles_post_ra>
